<compile_context>
chip_gen: v7x
topology: tpu7x:2x2x1
jax: 0.10.0
libtpu: 0.0.40
codegen_flags: <defaults>
</compile_context>

<pallas_src>
import functools

import jax
import jax.numpy as jnp
from jax.experimental import pallas as pl
from jax.experimental.pallas import tpu as pltpu


# ----------------------------------------------------------------------------
# Kernels
# ----------------------------------------------------------------------------
def _deeponet_fused_kernel(u_ref, y_ref, *refs):
    """Branch+trunk fused into block-diagonal matmuls (256-wide MXU tiles).

    u_ref, y_ref : (tile_b, din_b) / (tile_b, din_t), f32
    refs         : (w0, b0, w1, b1, ..., wL-1, bL-1, out_ref)
                   w_l : block-diag fused weight (bf16), b_l : (1, 2*out) f32
    out_ref      : (1, tile_b) f32 — lane-dense row of per-example dot products
    """
    out_ref = refs[-1]
    layer_refs = refs[:-1]
    num_layers = len(layer_refs) // 2
    cdtype = layer_refs[0].dtype          # compute dtype = weight dtype (bf16)

    # Fuse [u | y] along lanes in VMEM (both halves are lane-tile aligned, so
    # this is cheap placement — no HBM traffic).
    x = jnp.concatenate(
        [u_ref[...].astype(cdtype), y_ref[...].astype(cdtype)], axis=-1)

    for l in range(num_layers):
        w = layer_refs[2 * l][...]
        b = layer_refs[2 * l + 1][...]
        # bf16 x bf16 -> f32 accumulate on the MXU.
        h = jnp.dot(x, w, preferred_element_type=jnp.float32) + b
        if l < num_layers - 1:
            x = jnp.maximum(h, 0.0).astype(cdtype)   # ReLU on hidden layers
        else:
            x = h                                    # final layer: keep f32

    # x = [branch_out | trunk_out] along lanes.
    d = x.shape[-1] // 2
    prod = x[:, :d] * x[:, d:]                       # (tile_b, output_dim) f32
    # Lane-dense epilogue: XLU transpose + sublane reduce -> unmasked (1, tile_b)
    # store (no masked (tile_b, 1) column stores).
    out_ref[...] = jnp.sum(prod.T, axis=0, keepdims=True).astype(out_ref.dtype)


def _deeponet_split_kernel(u_ref, y_ref, *refs):
    """Separate branch/trunk streams (native 128-wide matmuls, best on v5e/v4).

    refs = (bw0, bb0, tw0, tb0, ..., bwL-1, bbL-1, twL-1, tbL-1, out_ref)
    """
    out_ref = refs[-1]
    layer_refs = refs[:-1]
    num_layers = len(layer_refs) // 4
    cdtype = layer_refs[0].dtype

    xb = u_ref[...].astype(cdtype)
    xt = y_ref[...].astype(cdtype)
    for l in range(num_layers):
        bw, bb, tw, tb = layer_refs[4 * l: 4 * l + 4]
        hb = jnp.dot(xb, bw[...], preferred_element_type=jnp.float32) + bb[...]
        ht = jnp.dot(xt, tw[...], preferred_element_type=jnp.float32) + tb[...]
        if l < num_layers - 1:
            xb = jnp.maximum(hb, 0.0).astype(cdtype)
            xt = jnp.maximum(ht, 0.0).astype(cdtype)
        else:
            xb, xt = hb, ht                          # final layer: keep f32

    prod = xb * xt                                   # (tile_b, output_dim) f32
    out_ref[...] = jnp.sum(prod.T, axis=0, keepdims=True).astype(out_ref.dtype)


# ----------------------------------------------------------------------------
# Packing (hoisted out of the forward path — do this once at init)
# ----------------------------------------------------------------------------
def _block_diag(a, b):
    z_top = jnp.zeros((a.shape[0], b.shape[1]), a.dtype)
    z_bot = jnp.zeros((b.shape[0], a.shape[1]), b.dtype)
    return jnp.concatenate(
        [jnp.concatenate([a, z_top], axis=1),
         jnp.concatenate([z_bot, b], axis=1)], axis=0)


def choose_block_diag_fusion(params):
    """Use block-diag fusion only where it fills a 256-wide MXU tile (v6e/v7x)
    and every layer width is lane aligned; on v5e/v4 (128x128 MXUs) the fused
    matmul would push 2x zeros for no gain, so use the split path there."""
    weights = params[0::2]
    dims_ok = all(w.shape[0] % 128 == 0 and w.shape[1] % 128 == 0 for w in weights)
    try:
        kind = jax.devices()[0].device_kind.lower()
    except Exception:
        kind = ""
    big_mxu = ("v6" in kind) or ("v7" in kind) or ("7x" in kind)
    return dims_ok and big_mxu


def pack_deeponet_params(params, *, fused, compute_dtype=jnp.bfloat16):
    """params = (bw0, bb0, ..., bwL, bbL, tw0, tb0, ..., twL, tbL), f32."""
    assert len(params) % 4 == 0, "expected (w, b) pairs for branch then trunk"
    n_layers = len(params) // 4
    bparams, tparams = params[:2 * n_layers], params[2 * n_layers:]
    packed = []
    for l in range(n_layers):
        bw, bb = bparams[2 * l], bparams[2 * l + 1]
        tw, tb = tparams[2 * l], tparams[2 * l + 1]
        assert bw.shape[1] == tw.shape[1], (
            "branch/trunk layer widths must match for the dot-product head")
        if fused:
            packed.append(_block_diag(bw, tw).astype(compute_dtype))
            packed.append(jnp.concatenate([bb, tb], axis=1).astype(jnp.float32))
        else:
            packed += [bw.astype(compute_dtype), bb.astype(jnp.float32),
                       tw.astype(compute_dtype), tb.astype(jnp.float32)]
    return tuple(packed)


# ----------------------------------------------------------------------------
# Forward wrapper
# ----------------------------------------------------------------------------
def _round_up(x, m):
    return (x + m - 1) // m * m


def _pick_tile_b(batch, max_tile=1024):
    """Lane-aligned batch tile: multiple of 128 whenever the grid has >1 step
    (keeps the (1, tile_b) out block on the unmasked lane-dense store path),
    >=2 grid steps whenever batch > 128 so a v7x 'parallel' grid keeps both
    TensorCores busy, capped at max_tile rows (amortizes the ~0.35 us/step
    grid overhead while staying well inside scoped VMEM on every chip)."""
    if batch <= 128:
        return _round_up(batch, 8)                     # single tile == full row
    b_pad = _round_up(batch, 128)
    if b_pad <= 2 * max_tile:
        return max(128, _round_up(b_pad // 2, 128))    # exactly 2 tiles
    return max_tile


@functools.partial(jax.jit, static_argnames=("fused", "tile_b"))
def deeponet_forward(u, y, packed_params, *, fused, tile_b=None):
    """u: (B, din_b) f32, y: (B, din_t) f32 (raw, un-padded, un-cast).
    packed_params: output of pack_deeponet_params (hoisted to init)."""
    B = u.shape[0]
    if tile_b is None:
        tile_b = _pick_tile_b(B)
    num_tiles = pl.cdiv(B, tile_b)
    b_pad = num_tiles * tile_b

    kernel = _deeponet_fused_kernel if fused else _deeponet_split_kernel

    in_specs = [
        pl.BlockSpec((tile_b, u.shape[1]), lambda i: (i, 0)),
        pl.BlockSpec((tile_b, y.shape[1]), lambda i: (i, 0)),
    ]
    # Constant index_maps: weights/biases are DMA'd once and stay VMEM-resident.
    in_specs += [pl.BlockSpec(p.shape, lambda i: (0, 0)) for p in packed_params]
    out_specs = pl.BlockSpec((1, tile_b), lambda i: (0, i))

    out = pl.pallas_call(
        kernel,
        out_shape=jax.ShapeDtypeStruct((1, b_pad), jnp.float32),
        grid=(num_tiles,),
        in_specs=in_specs,
        out_specs=out_specs,
        compiler_params=pltpu.CompilerParams(
            dimension_semantics=("parallel",),
            vmem_limit_bytes=32 * 1024 * 1024,
        ),
    )(u, y, *packed_params)

    # (1, b_pad) lane-dense result -> (B, 1) (matches torch.sum(..., keepdim=True)).
    return out[0, :B][:, None]


# ----------------------------------------------------------------------------
# Init + pure-JAX reference
# ----------------------------------------------------------------------------
def xavier_uniform(key, fan_in, fan_out, dtype=jnp.float32):
    bound = (6.0 / (fan_in + fan_out)) ** 0.5
    return jax.random.uniform(key, (fan_in, fan_out), dtype=dtype,
                              minval=-bound, maxval=bound)


def init_deeponet_params(key, branch_input_dim, trunk_input_dim,
                         hidden_dims, output_dim):
    branch_dims = [branch_input_dim] + list(hidden_dims) + [output_dim]
    trunk_dims = [trunk_input_dim] + list(hidden_dims) + [output_dim]
    keys = jax.random.split(key, len(branch_dims) - 1 + len(trunk_dims) - 1)
    params, ki = [], 0
    for d_in, d_out in zip(branch_dims[:-1], branch_dims[1:]):
        params.append(xavier_uniform(keys[ki], d_in, d_out)); ki += 1
        params.append(jnp.zeros((1, d_out), jnp.float32))     # bias kept 2-D
    for d_in, d_out in zip(trunk_dims[:-1], trunk_dims[1:]):
        params.append(xavier_uniform(keys[ki], d_in, d_out)); ki += 1
        params.append(jnp.zeros((1, d_out), jnp.float32))
    return tuple(params)


def deeponet_reference(u, y, params, compute_dtype=jnp.bfloat16):
    """Pure-JAX reference mirroring the kernel's bf16-matmul / f32-accumulate math."""
    n_layers = len(params) // 4
    bparams, tparams = params[:2 * n_layers], params[2 * n_layers:]

    def mlp(x, ps):
        for l in range(n_layers):
            w, b = ps[2 * l], ps[2 * l + 1]
            h = jnp.dot(x.astype(compute_dtype), w.astype(compute_dtype),
                        preferred_element_type=jnp.float32) + b
            x = jnp.maximum(h, 0.0) if l < n_layers - 1 else h
        return x

    bo = mlp(u, bparams)
    to = mlp(y, tparams)
    return jnp.sum(bo * to, axis=-1, keepdims=True)


# ----------------------------------------------------------------------------
# Demo / check
# ----------------------------------------------------------------------------
if __name__ == "__main__":
    # Shapes consistent with the module: 3 Linear layers per net, width 128.
    B = 512
    branch_input_dim = 128
    trunk_input_dim = 128
    hidden_dims = [128, 128]
    output_dim = 128

    key = jax.random.PRNGKey(0)
    k_u, k_y, k_p = jax.random.split(key, 3)
    u = jax.random.normal(k_u, (B, branch_input_dim), jnp.float32)
    v = jax.random.normal(k_y, (B, trunk_input_dim), jnp.float32)
    params = init_deeponet_params(k_p, branch_input_dim, trunk_input_dim,
                                  hidden_dims, output_dim)

    ref = jax.block_until_ready(deeponet_reference(u, v, params))

    # Auto-selected path for this device (block-diag fused on v6e/v7x, split on v5e).
    auto_fused = choose_block_diag_fusion(params)
    packed_auto = pack_deeponet_params(params, fused=auto_fused)   # packed once
    out = jax.block_until_ready(deeponet_forward(u, v, packed_auto, fused=auto_fused))
    assert out.shape == (B, 1), out.shape
    assert jnp.allclose(out, ref, atol=5e-3, rtol=5e-3), \
        f"max abs err {jnp.max(jnp.abs(out - ref))}"

    # Ragged batch (B=200 -> 2 tiles of 128: exercises boundary masking and
    # keeps both v7x TensorCores fed).
    B2 = 200
    out2 = jax.block_until_ready(
        deeponet_forward(u[:B2], v[:B2], packed_auto, fused=auto_fused))
    assert out2.shape == (B2, 1), out2.shape
    assert jnp.allclose(out2, ref[:B2], atol=5e-3, rtol=5e-3), \
        f"max abs err {jnp.max(jnp.abs(out2 - ref[:B2]))}"

    # Exercise the other path too (both kernels must compile & agree on any chip).
    other_fused = not auto_fused
    packed_other = pack_deeponet_params(params, fused=other_fused)
    out3 = jax.block_until_ready(deeponet_forward(u, v, packed_other, fused=other_fused))
    assert jnp.allclose(out3, ref, atol=5e-3, rtol=5e-3), \
        f"max abs err {jnp.max(jnp.abs(out3 - ref))}"

    print("KERNEL_OK")
</pallas_src>

<mosaic_0001>
module attributes {stable_mosaic.version = 11 : i64} {
  func.func @_deeponet_split_kernel(%arg0: i32, %arg1: memref<256x128xf32, #tpu.memory_space<vmem>>, %arg2: memref<256x128xf32, #tpu.memory_space<vmem>>, %arg3: memref<128x128xbf16, #tpu.memory_space<vmem>>, %arg4: memref<1x128xf32, #tpu.memory_space<vmem>>, %arg5: memref<128x128xbf16, #tpu.memory_space<vmem>>, %arg6: memref<1x128xf32, #tpu.memory_space<vmem>>, %arg7: memref<128x128xbf16, #tpu.memory_space<vmem>>, %arg8: memref<1x128xf32, #tpu.memory_space<vmem>>, %arg9: memref<128x128xbf16, #tpu.memory_space<vmem>>, %arg10: memref<1x128xf32, #tpu.memory_space<vmem>>, %arg11: memref<128x128xbf16, #tpu.memory_space<vmem>>, %arg12: memref<1x128xf32, #tpu.memory_space<vmem>>, %arg13: memref<128x128xbf16, #tpu.memory_space<vmem>>, %arg14: memref<1x128xf32, #tpu.memory_space<vmem>>, %arg15: memref<1x256xf32, #tpu.memory_space<vmem>>) attributes {dimension_semantics = [#tpu.dimension_semantics<parallel>], iteration_bounds = array<i64: 2>, scalar_prefetch = 0 : i64, scratch_operands = 0 : i64, tpu.core_type = #tpu.core_type<tc>, window_params = [{transform_indices = @transform_0, window_bounds = array<i64: 256, 128>}, {transform_indices = @transform_1, window_bounds = array<i64: 256, 128>}, {pipeline_mode = #tpu.pipeline_mode<synchronous>, transform_indices = @transform_2, window_bounds = array<i64: 128, 128>}, {pipeline_mode = #tpu.pipeline_mode<synchronous>, transform_indices = @transform_3, window_bounds = array<i64: 1, 128>}, {pipeline_mode = #tpu.pipeline_mode<synchronous>, transform_indices = @transform_4, window_bounds = array<i64: 128, 128>}, {pipeline_mode = #tpu.pipeline_mode<synchronous>, transform_indices = @transform_5, window_bounds = array<i64: 1, 128>}, {pipeline_mode = #tpu.pipeline_mode<synchronous>, transform_indices = @transform_6, window_bounds = array<i64: 128, 128>}, {pipeline_mode = #tpu.pipeline_mode<synchronous>, transform_indices = @transform_7, window_bounds = array<i64: 1, 128>}, {pipeline_mode = #tpu.pipeline_mode<synchronous>, transform_indices = @transform_8, window_bounds = array<i64: 128, 128>}, {pipeline_mode = #tpu.pipeline_mode<synchronous>, transform_indices = @transform_9, window_bounds = array<i64: 1, 128>}, {pipeline_mode = #tpu.pipeline_mode<synchronous>, transform_indices = @transform_10, window_bounds = array<i64: 128, 128>}, {pipeline_mode = #tpu.pipeline_mode<synchronous>, transform_indices = @transform_11, window_bounds = array<i64: 1, 128>}, {pipeline_mode = #tpu.pipeline_mode<synchronous>, transform_indices = @transform_12, window_bounds = array<i64: 128, 128>}, {pipeline_mode = #tpu.pipeline_mode<synchronous>, transform_indices = @transform_13, window_bounds = array<i64: 1, 128>}, {transform_indices = @transform_14, window_bounds = array<i64: 1, 256>}]} {
    %c0 = arith.constant 0 : index
    %c0_0 = arith.constant 0 : index
    %0 = vector.load %arg1[%c0, %c0_0] : memref<256x128xf32, #tpu.memory_space<vmem>>, vector<256x128xf32>
    %1 = arith.truncf %0 : vector<256x128xf32> to vector<256x128xbf16>
    %c0_1 = arith.constant 0 : index
    %c0_2 = arith.constant 0 : index
    %2 = vector.load %arg2[%c0_1, %c0_2] : memref<256x128xf32, #tpu.memory_space<vmem>>, vector<256x128xf32>
    %3 = arith.truncf %2 : vector<256x128xf32> to vector<256x128xbf16>
    %c0_3 = arith.constant 0 : index
    %c0_4 = arith.constant 0 : index
    %4 = vector.load %arg3[%c0_3, %c0_4] : memref<128x128xbf16, #tpu.memory_space<vmem>>, vector<128x128xbf16>
    %cst = arith.constant dense<0.000000e+00> : vector<256x128xf32>
    %5 = tpu.matmul %1, %4, %cst {dimension_numbers = #tpu.dot_dimension_numbers<[1], [0], [0], [1], [0, 0, 1, 1], [], []>} : vector<256x128xbf16>, vector<128x128xbf16>, vector<256x128xf32> -> vector<256x128xf32>
    %c0_5 = arith.constant 0 : index
    %c0_6 = arith.constant 0 : index
    %6 = vector.load %arg4[%c0_5, %c0_6] : memref<1x128xf32, #tpu.memory_space<vmem>>, vector<1x128xf32>
    %7 = vector.broadcast %6 : vector<1x128xf32> to vector<256x128xf32>
    %8 = arith.addf %5, %7 : vector<256x128xf32>
    %c0_7 = arith.constant 0 : index
    %c0_8 = arith.constant 0 : index
    %9 = vector.load %arg5[%c0_7, %c0_8] : memref<128x128xbf16, #tpu.memory_space<vmem>>, vector<128x128xbf16>
    %cst_9 = arith.constant dense<0.000000e+00> : vector<256x128xf32>
    %10 = tpu.matmul %3, %9, %cst_9 {dimension_numbers = #tpu.dot_dimension_numbers<[1], [0], [0], [1], [0, 0, 1, 1], [], []>} : vector<256x128xbf16>, vector<128x128xbf16>, vector<256x128xf32> -> vector<256x128xf32>
    %c0_10 = arith.constant 0 : index
    %c0_11 = arith.constant 0 : index
    %11 = vector.load %arg6[%c0_10, %c0_11] : memref<1x128xf32, #tpu.memory_space<vmem>>, vector<1x128xf32>
    %12 = vector.broadcast %11 : vector<1x128xf32> to vector<256x128xf32>
    %13 = arith.addf %10, %12 : vector<256x128xf32>
    %cst_12 = arith.constant 0.000000e+00 : f32
    %14 = vector.broadcast %cst_12 : f32 to vector<256x128xf32>
    %15 = arith.maximumf %8, %14 : vector<256x128xf32>
    %16 = arith.truncf %15 : vector<256x128xf32> to vector<256x128xbf16>
    %cst_13 = arith.constant 0.000000e+00 : f32
    %17 = vector.broadcast %cst_13 : f32 to vector<256x128xf32>
    %18 = arith.maximumf %13, %17 : vector<256x128xf32>
    %19 = arith.truncf %18 : vector<256x128xf32> to vector<256x128xbf16>
    %c0_14 = arith.constant 0 : index
    %c0_15 = arith.constant 0 : index
    %20 = vector.load %arg7[%c0_14, %c0_15] : memref<128x128xbf16, #tpu.memory_space<vmem>>, vector<128x128xbf16>
    %cst_16 = arith.constant dense<0.000000e+00> : vector<256x128xf32>
    %21 = tpu.matmul %16, %20, %cst_16 {dimension_numbers = #tpu.dot_dimension_numbers<[1], [0], [0], [1], [0, 0, 1, 1], [], []>} : vector<256x128xbf16>, vector<128x128xbf16>, vector<256x128xf32> -> vector<256x128xf32>
    %c0_17 = arith.constant 0 : index
    %c0_18 = arith.constant 0 : index
    %22 = vector.load %arg8[%c0_17, %c0_18] : memref<1x128xf32, #tpu.memory_space<vmem>>, vector<1x128xf32>
    %23 = vector.broadcast %22 : vector<1x128xf32> to vector<256x128xf32>
    %24 = arith.addf %21, %23 : vector<256x128xf32>
    %c0_19 = arith.constant 0 : index
    %c0_20 = arith.constant 0 : index
    %25 = vector.load %arg9[%c0_19, %c0_20] : memref<128x128xbf16, #tpu.memory_space<vmem>>, vector<128x128xbf16>
    %cst_21 = arith.constant dense<0.000000e+00> : vector<256x128xf32>
    %26 = tpu.matmul %19, %25, %cst_21 {dimension_numbers = #tpu.dot_dimension_numbers<[1], [0], [0], [1], [0, 0, 1, 1], [], []>} : vector<256x128xbf16>, vector<128x128xbf16>, vector<256x128xf32> -> vector<256x128xf32>
    %c0_22 = arith.constant 0 : index
    %c0_23 = arith.constant 0 : index
    %27 = vector.load %arg10[%c0_22, %c0_23] : memref<1x128xf32, #tpu.memory_space<vmem>>, vector<1x128xf32>
    %28 = vector.broadcast %27 : vector<1x128xf32> to vector<256x128xf32>
    %29 = arith.addf %26, %28 : vector<256x128xf32>
    %cst_24 = arith.constant 0.000000e+00 : f32
    %30 = vector.broadcast %cst_24 : f32 to vector<256x128xf32>
    %31 = arith.maximumf %24, %30 : vector<256x128xf32>
    %32 = arith.truncf %31 : vector<256x128xf32> to vector<256x128xbf16>
    %cst_25 = arith.constant 0.000000e+00 : f32
    %33 = vector.broadcast %cst_25 : f32 to vector<256x128xf32>
    %34 = arith.maximumf %29, %33 : vector<256x128xf32>
    %35 = arith.truncf %34 : vector<256x128xf32> to vector<256x128xbf16>
    %c0_26 = arith.constant 0 : index
    %c0_27 = arith.constant 0 : index
    %36 = vector.load %arg11[%c0_26, %c0_27] : memref<128x128xbf16, #tpu.memory_space<vmem>>, vector<128x128xbf16>
    %cst_28 = arith.constant dense<0.000000e+00> : vector<256x128xf32>
    %37 = tpu.matmul %32, %36, %cst_28 {dimension_numbers = #tpu.dot_dimension_numbers<[1], [0], [0], [1], [0, 0, 1, 1], [], []>} : vector<256x128xbf16>, vector<128x128xbf16>, vector<256x128xf32> -> vector<256x128xf32>
    %c0_29 = arith.constant 0 : index
    %c0_30 = arith.constant 0 : index
    %38 = vector.load %arg12[%c0_29, %c0_30] : memref<1x128xf32, #tpu.memory_space<vmem>>, vector<1x128xf32>
    %39 = vector.broadcast %38 : vector<1x128xf32> to vector<256x128xf32>
    %40 = arith.addf %37, %39 : vector<256x128xf32>
    %c0_31 = arith.constant 0 : index
    %c0_32 = arith.constant 0 : index
    %41 = vector.load %arg13[%c0_31, %c0_32] : memref<128x128xbf16, #tpu.memory_space<vmem>>, vector<128x128xbf16>
    %cst_33 = arith.constant dense<0.000000e+00> : vector<256x128xf32>
    %42 = tpu.matmul %35, %41, %cst_33 {dimension_numbers = #tpu.dot_dimension_numbers<[1], [0], [0], [1], [0, 0, 1, 1], [], []>} : vector<256x128xbf16>, vector<128x128xbf16>, vector<256x128xf32> -> vector<256x128xf32>
    %c0_34 = arith.constant 0 : index
    %c0_35 = arith.constant 0 : index
    %43 = vector.load %arg14[%c0_34, %c0_35] : memref<1x128xf32, #tpu.memory_space<vmem>>, vector<1x128xf32>
    %44 = vector.broadcast %43 : vector<1x128xf32> to vector<256x128xf32>
    %45 = arith.addf %42, %44 : vector<256x128xf32>
    %46 = arith.mulf %40, %45 : vector<256x128xf32>
    %47 = tpu.transpose %46, [1, 0] : vector<256x128xf32> -> vector<128x256xf32>
    %cst_36 = arith.constant dense<0.000000e+00> : vector<256xf32>
    %48 = vector.multi_reduction <add>, %47, %cst_36 [0] : vector<128x256xf32> to vector<256xf32>
    %49 = vector.shape_cast %48 : vector<256xf32> to vector<1x256xf32>
    %c0_37 = arith.constant 0 : index
    %c0_38 = arith.constant 0 : index
    %50 = vector.load %arg15[%c0_37, %c0_38] : memref<1x256xf32, #tpu.memory_space<vmem>>, vector<1x256xf32>
    tpu.vector_store %arg15[%c0_37, %c0_38], %49 {strides = array<i32>} : memref<1x256xf32, #tpu.memory_space<vmem>>, vector<1x256xf32>,
    return
  }
  func.func @transform_0(%arg0: i32) -> (i32, i32) {
    %c0_i32 = arith.constant 0 : i32
    %c0_i32_0 = arith.constant 0 : i32
    return %arg0, %c0_i32 : i32, i32
  }
  func.func @transform_1(%arg0: i32) -> (i32, i32) {
    %c0_i32 = arith.constant 0 : i32
    %c0_i32_0 = arith.constant 0 : i32
    return %arg0, %c0_i32 : i32, i32
  }
  func.func @transform_2(%arg0: i32) -> (i32, i32) {
    %c0_i32 = arith.constant 0 : i32
    %c0_i32_0 = arith.constant 0 : i32
    %c0_i32_1 = arith.constant 0 : i32
    return %c0_i32, %c0_i32_0 : i32, i32
  }
  func.func @transform_3(%arg0: i32) -> (i32, i32) {
    %c0_i32 = arith.constant 0 : i32
    %c0_i32_0 = arith.constant 0 : i32
    %c0_i32_1 = arith.constant 0 : i32
    return %c0_i32, %c0_i32_0 : i32, i32
  }
  func.func @transform_4(%arg0: i32) -> (i32, i32) {
    %c0_i32 = arith.constant 0 : i32
    %c0_i32_0 = arith.constant 0 : i32
    %c0_i32_1 = arith.constant 0 : i32
    return %c0_i32, %c0_i32_0 : i32, i32
  }
  func.func @transform_5(%arg0: i32) -> (i32, i32) {
    %c0_i32 = arith.constant 0 : i32
    %c0_i32_0 = arith.constant 0 : i32
    %c0_i32_1 = arith.constant 0 : i32
    return %c0_i32, %c0_i32_0 : i32, i32
  }
  func.func @transform_6(%arg0: i32) -> (i32, i32) {
    %c0_i32 = arith.constant 0 : i32
    %c0_i32_0 = arith.constant 0 : i32
    %c0_i32_1 = arith.constant 0 : i32
    return %c0_i32, %c0_i32_0 : i32, i32
  }
  func.func @transform_7(%arg0: i32) -> (i32, i32) {
    %c0_i32 = arith.constant 0 : i32
    %c0_i32_0 = arith.constant 0 : i32
    %c0_i32_1 = arith.constant 0 : i32
    return %c0_i32, %c0_i32_0 : i32, i32
  }
  func.func @transform_8(%arg0: i32) -> (i32, i32) {
    %c0_i32 = arith.constant 0 : i32
    %c0_i32_0 = arith.constant 0 : i32
    %c0_i32_1 = arith.constant 0 : i32
    return %c0_i32, %c0_i32_0 : i32, i32
  }
  func.func @transform_9(%arg0: i32) -> (i32, i32) {
    %c0_i32 = arith.constant 0 : i32
    %c0_i32_0 = arith.constant 0 : i32
    %c0_i32_1 = arith.constant 0 : i32
    return %c0_i32, %c0_i32_0 : i32, i32
  }
  func.func @transform_10(%arg0: i32) -> (i32, i32) {
    %c0_i32 = arith.constant 0 : i32
    %c0_i32_0 = arith.constant 0 : i32
    %c0_i32_1 = arith.constant 0 : i32
    return %c0_i32, %c0_i32_0 : i32, i32
  }
  func.func @transform_11(%arg0: i32) -> (i32, i32) {
    %c0_i32 = arith.constant 0 : i32
    %c0_i32_0 = arith.constant 0 : i32
    %c0_i32_1 = arith.constant 0 : i32
    return %c0_i32, %c0_i32_0 : i32, i32
  }
  func.func @transform_12(%arg0: i32) -> (i32, i32) {
    %c0_i32 = arith.constant 0 : i32
    %c0_i32_0 = arith.constant 0 : i32
    %c0_i32_1 = arith.constant 0 : i32
    return %c0_i32, %c0_i32_0 : i32, i32
  }
  func.func @transform_13(%arg0: i32) -> (i32, i32) {
    %c0_i32 = arith.constant 0 : i32
    %c0_i32_0 = arith.constant 0 : i32
    %c0_i32_1 = arith.constant 0 : i32
    return %c0_i32, %c0_i32_0 : i32, i32
  }
  func.func @transform_14(%arg0: i32) -> (i32, i32) {
    %c0_i32 = arith.constant 0 : i32
    %c0_i32_0 = arith.constant 0 : i32
    return %c0_i32, %arg0 : i32, i32
  }
}

</mosaic_0001>

<bundles_post_ra>
// kernel: deeponet_forward.1
= control target key start
LH: loop header
LB: loop body
LE: loop exit
PB: predicated region body
PF: predicated region fallthrough
CT: control target
= control target key end

     0   :  { %s4419_s0 = inlined_call_operand.hbm [shape: f32[512,128], index: 0, kind: input, shape index: {}]   ;;  %s4420_s1 = inlined_call_operand.hbm [shape: f32[512,128], index: 1, kind: input, shape index: {}]   ;;  %s4421_s2 = inlined_call_operand.hbm [shape: bf16[128,128], index: 2, kind: input, shape index: {}]   ;;  %s4422_s3 = inlined_call_operand.vmem [shape: f32[1,128], index: 3, kind: input, shape index: {}]   ;;  %s4423_s4 = inlined_call_operand.hbm [shape: bf16[128,128], index: 4, kind: input, shape index: {}]   ;;  %s4424_s5 = inlined_call_operand.vmem [shape: f32[1,128], index: 5, kind: input, shape index: {}]   ;;  %s4425_s6 = inlined_call_operand.hbm [shape: bf16[128,128], index: 6, kind: input, shape index: {}]   ;;  %s4426_s7 = inlined_call_operand.vmem [shape: f32[1,128], index: 7, kind: input, shape index: {}]   ;;  %s4427_s8 = inlined_call_operand.hbm [shape: bf16[128,128], index: 8, kind: input, shape index: {}]   ;;  %s4428_s9 = inlined_call_operand.vmem [shape: f32[1,128], index: 9, kind: input, shape index: {}]   ;;  %s4429_s10 = inlined_call_operand.hbm [shape: bf16[128,128], index: 10, kind: input, shape index: {}]   ;;  %s4430_s11 = inlined_call_operand.vmem [shape: f32[1,128], index: 11, kind: input, shape index: {}]   ;;  %s4431_s12 = inlined_call_operand.hbm [shape: bf16[128,128], index: 12, kind: input, shape index: {}]   ;;  %s4432_s13 = inlined_call_operand.vmem [shape: f32[1,128], index: 13, kind: input, shape index: {}]   ;;  %s4433_s14 = inlined_call_operand.hbm [shape: f32[1,512], index: 14, kind: output, shape index: {}]  }
   0x1   :  { %4439 = sst [smem:[#allocation24_spill]] %s4419_s0 }
   0x2   :  { %4440 = sst [smem:[#allocation25_spill]] %s4421_s2 }
   0x3   :  { %4441 = sst [smem:[#allocation26_spill]] %s4423_s4 }
   0x4   :  { %4442 = sst [smem:[#allocation27_spill]] %s4424_s5 }
   0x5   :  { %4443 = sst [smem:[#allocation28_spill]] %s4425_s6 }
   0x6   :  { %4444 = sst [smem:[#allocation29_spill]] %s4426_s7 }
   0x7   :  { %4445 = sst [smem:[#allocation30_spill]] %s4427_s8 }
   0x8   :  { %4446 = sst [smem:[#allocation31_spill]] %s4428_s9 }
   0x9   :  { %4447 = sst [smem:[#allocation32_spill]] %s4430_s11 }
   0xa   :  { %4448 = sst [smem:[#allocation33_spill]] %s4432_s13 }
   0xb   :  { %4449 = sst [smem:[#allocation34_spill]] %s4433_s14 }
   0xc   :  { %19 = vsyncpa [#allocation3], 0 }
   0xd   :  { %21 = vsyncpa [#allocation3 + $0x1], 0 }
   0xe   :  { %22 = vsyncpa [#allocation6], 0 }
   0xf   :  { %24 = vsyncpa [#allocation6 + $0x1], 0 }
  0x10   :  { %25 = vsyncpa [#allocation9], 0 }
  0x11   :  { %26 = vsyncpa [#allocation12], 0 }
  0x12   :  { %27 = vsyncpa [#allocation15], 0 }
  0x13   :  { %28 = vsyncpa [#allocation4], 0 }
  0x14   :  { %30 = vsyncpa [#allocation4 + $0x1], 0  ;;  %s3712_s29 = smov 0   ;;  %s3714_s30 = smov 0  }
  0x15   :  { %s3716_s15 = smov 0   ;;  %s3718_s16 = smov 0  }
  0x16 LB: > { %s3623_s17 = smov [#allocation7]   ;;  %s3733_s19 = sadd.s32 4294967295, %s3621_s16   ;;  %s3621_s16 = sphi %s3718_s16, %s4486_s16   ;;  %s3617_s15 = sphi %s3716_s15, %s4485_s15   ;;  %s3613_s30 = sphi %s3714_s30, %s4484_s30   ;;  %s3609_s29 = sphi %s3712_s29, %s4483_s29  }
  0x17   : > { %s383_s18 = sshll.u32 %s3623_s17, 4  ;;  %p2624_p0 = scmp.ge.s32.totalorder %s3621_s16, 1  ;;  %s3738_s18 = int_to_ptr.vmem [resolvable:$true] %s383_s18 }
  0x18   : > { %p4435_p1 = scmp.eq.s32.totalorder %s3733_s19, 0  ;;  %p371_p2 = scmp.lt.s32.totalorder %s3621_s16, 3 }
  0x19   : > { %s3624_s21 = smov [#allocation8]   ;;  %s3625_s24 = smov [#allocation11]  }
  0x1a   : > { %p3740_p3 = pnand %p2624_p0, %p371_p2  ;;  %s399_s22 = sshll.u32 %s3624_s21, 4  ;;  %s3753_s22 = int_to_ptr.vmem [resolvable:$true] %s399_s22 }
  0x1b   : > { %s431_s25 = sshll.u32 %s3625_s24, 4  ;;  %s4452_s2 = sld [smem:[#allocation25_spill]]  ;;  %s3755_s25 = int_to_ptr.vmem [resolvable:$true] %s431_s25 }
  0x1c   : > { %s4450_s20 = scalar_select %p3740_p3, 1, 0 }
  0x1d   : > { %p3172_p5 = pneg %p3740_p3 }
  0x1f   : > { %p3749_p6 = pnand %p3172_p5, %p4435_p1 }
  0x21   : > { %s3307_s28 = scalar_lea.hbm %s4452_s2, 1024  ;;  %p3765_p8 = pneg %p3749_p6 }
  0x22   : > { %p3308_p7 = scmp.ne.s32.totalorder %s4452_s2, %s3307_s28  ;;  %p3314_p11 = scmp.lt.u32.totalorder %s3307_s28, %s4452_s2 }
  0x24   : > { %p3310_p9 = pnand %p3765_p8, %p3308_p7 }
  0x26   : > { %p3311_p10 = pneg %p3310_p9 }
  0x28   : > { %p3316_p12 = pnand %p3314_p11, %p3311_p10 }
  0x2a   : > { %3319 = shalt.err (!%p3316_p12)
}
  0x2b   : > { %s3320_s14 = scalar_lea.vmem %s3738_s18, 1024  ;;  %p3328_p5 = scmp.lt.s32.totalorder %s3738_s18, %s3738_s18 }
  0x2c   : > { %p3321_p13 = scmp.ne.s32.totalorder %s3738_s18, %s3320_s14  ;;  %p3329_p4 = scmp.lt.s32.totalorder %s3320_s14, %s3320_s14 }
  0x2e   : > { %p3323_p0 = pnand %p3321_p13, %p3765_p8  ;;  %p3330_p7 = por %p3329_p4, %p3328_p5 }
  0x30   : > { %p3324_p2 = pneg %p3323_p0 }
  0x32   : > { %p3331_p9 = pnand %p3330_p7, %p3324_p2 }
  0x34   : > { %3334 = shalt.err (!%p3331_p9)
}
  0x35   : > { %s3626_s26 = smov 64   ;;  %s3627_s13 = smov 4  }
  0x36   : > { %3175 = dma.hbm_to_vmem [thread:$0]  (!%p3749_p6), %s4452_s2, 1024, %s3738_s18, [#allocation6], %s3626_s26, %s3626_s26, %s3627_s13  }
  0x37   : > { %s4454_s4 = sld [smem:[#allocation26_spill]] }
  0x3d   : > { %s3335_s14 = scalar_lea.hbm %s4454_s4, 1024 }
  0x3e   : > { %p3336_p4 = scmp.ne.s32.totalorder %s4454_s4, %s3335_s14  ;;  %p3342_p12 = scmp.lt.u32.totalorder %s3335_s14, %s4454_s4 }
  0x40   : > { %p3338_p10 = pnand %p3336_p4, %p3765_p8 }
  0x42   : > { %p3339_p11 = pneg %p3338_p10 }
  0x44   : > { %p3344_p13 = pnand %p3342_p12, %p3339_p11 }
  0x46   : > { %3347 = shalt.err (!%p3344_p13)
}
  0x47   : > { %s3348_s18 = scalar_lea.vmem %s3753_s22, 1024  ;;  %p3356_p7 = scmp.lt.s32.totalorder %s3753_s22, %s3753_s22 }
  0x48   : > { %p3349_p0 = scmp.ne.s32.totalorder %s3753_s22, %s3348_s18  ;;  %p3357_p9 = scmp.lt.s32.totalorder %s3348_s18, %s3348_s18 }
  0x4a   : > { %p3351_p2 = pnand %p3349_p0, %p3765_p8  ;;  %p3358_p4 = por %p3357_p9, %p3356_p7 }
  0x4c   : > { %p3352_p5 = pneg %p3351_p2 }
  0x4e   : > { %p3359_p10 = pnand %p3358_p4, %p3352_p5 }
  0x50   : > { %3362 = shalt.err (!%p3359_p10)
}
  0x51   : > { %3178 = dma.hbm_to_vmem [thread:$0]  (!%p3749_p6), %s4454_s4, 1024, %s3753_s22, [#allocation9], %s3626_s26, %s3626_s26, %s3627_s13  }
  0x52   : > { %s4455_s8 = sld [smem:[#allocation30_spill]] }
  0x58   : > { %s3363_s27 = scalar_lea.hbm %s4455_s8, 1024 }
  0x59   : > { %p3364_p11 = scmp.ne.s32.totalorder %s4455_s8, %s3363_s27  ;;  %p3370_p0 = scmp.lt.u32.totalorder %s3363_s27, %s4455_s8 }
  0x5b   : > { %p3366_p12 = pnand %p3364_p11, %p3765_p8 }
  0x5d   : > { %p3367_p13 = pneg %p3366_p12 }
  0x5f   : > { %p3372_p2 = pnand %p3370_p0, %p3367_p13 }
  0x61   : > { %3375 = shalt.err (!%p3372_p2)
}
  0x62   : > { %s3376_s22 = scalar_lea.vmem %s3755_s25, 1024  ;;  %p3384_p4 = scmp.lt.s32.totalorder %s3755_s25, %s3755_s25 }
  0x63   : > { %p3377_p5 = scmp.ne.s32.totalorder %s3755_s25, %s3376_s22  ;;  %p3385_p10 = scmp.lt.s32.totalorder %s3376_s22, %s3376_s22 }
  0x65   : > { %p3379_p7 = pnand %p3377_p5, %p3765_p8  ;;  %p3386_p11 = por %p3385_p10, %p3384_p4 }
  0x67   : > { %p3380_p9 = pneg %p3379_p7 }
  0x69   : > { %p3387_p12 = pnand %p3386_p11, %p3380_p9 }
  0x6b   : > { %3390 = shalt.err (!%p3387_p12)
}
  0x6c   : > { %3184 = dma.hbm_to_vmem [thread:$0]  (!%p3749_p6), %s4455_s8, 1024, %s3755_s25, [#allocation12], %s3626_s26, %s3626_s26, %s3627_s13  }
  0x6d   : > { %s3628_s7 = smov [#allocation10]   ;;  %s3629_s11 = smov [#allocation13]  }
  0x6e   : > { %s415_s9 = sshll.u32 %s3628_s7, 4  ;;  %s447_s27 = sshll.u32 %s3629_s11, 4  ;;  %s416_s9 = int_to_ptr.vmem [resolvable:$true] %s415_s9  ;;  %s448_s27 = int_to_ptr.vmem [resolvable:$true] %s447_s27 }
  0x6f   : > { %s4456_s6 = sld [smem:[#allocation28_spill]] }
  0x75   : > { %s3391_s24 = scalar_lea.hbm %s4456_s6, 1024 }
  0x76   : > { %p3392_p13 = scmp.ne.s32.totalorder %s4456_s6, %s3391_s24  ;;  %p3398_p5 = scmp.lt.u32.totalorder %s3391_s24, %s4456_s6 }
  0x78   : > { %p3394_p0 = pnand %p3392_p13, %p3765_p8 }
  0x7a   : > { %p3395_p2 = pneg %p3394_p0 }
  0x7c   : > { %p3400_p7 = pnand %p3398_p5, %p3395_p2 }
  0x7e   : > { %3403 = shalt.err (!%p3400_p7)
}
  0x7f   : > { %s3404_s25 = scalar_lea.vmem %s416_s9, 1024  ;;  %p3412_p11 = scmp.lt.s32.totalorder %s416_s9, %s416_s9 }
  0x80   : > { %p3405_p9 = scmp.ne.s32.totalorder %s416_s9, %s3404_s25  ;;  %p3413_p12 = scmp.lt.s32.totalorder %s3404_s25, %s3404_s25 }
  0x82   : > { %p3407_p4 = pnand %p3405_p9, %p3765_p8  ;;  %p3414_p1 = por %p3413_p12, %p3412_p11 }
  0x84   : > { %p3408_p10 = pneg %p3407_p4 }
  0x86   : > { %p3415_p3 = pnand %p3414_p1, %p3408_p10 }
  0x88   : > { %3418 = shalt.err (!%p3415_p3)
}
  0x89   : > { %3181 = dma.hbm_to_vmem [thread:$0]  (!%p3749_p6), %s4456_s6, 1024, %s416_s9, [#allocation9], %s3626_s26, %s3626_s26, %s3627_s13  }
  0x8a   : > { %s3419_s28 = scalar_lea.hbm %s4429_s10, 1024 }
  0x8b   : > { %p3420_p1 = scmp.ne.s32.totalorder %s4429_s10, %s3419_s28  ;;  %p3426_p0 = scmp.lt.u32.totalorder %s3419_s28, %s4429_s10 }
  0x8d   : > { %p3422_p3 = pnand %p3420_p1, %p3765_p8 }
  0x8f   : > { %p3423_p13 = pneg %p3422_p3 }
  0x91   : > { %p3428_p2 = pnand %p3426_p0, %p3423_p13 }
  0x93   : > { %3431 = shalt.err (!%p3428_p2)
}
  0x94   : > { %s3432_s18 = scalar_lea.vmem %s448_s27, 1024  ;;  %p3440_p4 = scmp.lt.s32.totalorder %s448_s27, %s448_s27 }
  0x95   : > { %p3433_p5 = scmp.ne.s32.totalorder %s448_s27, %s3432_s18  ;;  %p3441_p10 = scmp.lt.s32.totalorder %s3432_s18, %s3432_s18 }
  0x97   : > { %p3435_p7 = pnand %p3433_p5, %p3765_p8  ;;  %p3442_p11 = por %p3441_p10, %p3440_p4 }
  0x99   : > { %p3436_p9 = pneg %p3435_p7 }
  0x9b   : > { %p3443_p12 = pnand %p3442_p11, %p3436_p9 }
  0x9d   : > { %3446 = shalt.err (!%p3443_p12)
}
  0x9e   : > { %3187 = dma.hbm_to_vmem [thread:$0]  (!%p3749_p6), %s4429_s10, 1024, %s448_s27, [#allocation12], %s3626_s26, %s3626_s26, %s3627_s13  }
  0x9f   : > { %s3630_s2 = smov [#allocation14]   ;;  %s3447_s28 = scalar_lea.hbm %s4431_s12, 1024 }
  0xa0   : > { %s463_s5 = sshll.u32 %s3630_s2, 4  ;;  %p3448_p1 = scmp.ne.s32.totalorder %s4431_s12, %s3447_s28  ;;  %s464_s5 = int_to_ptr.vmem [resolvable:$true] %s463_s5 }
  0xa1   : > { %p3454_p0 = scmp.lt.u32.totalorder %s3447_s28, %s4431_s12 }
  0xa2   : > { %p3450_p3 = pnand %p3448_p1, %p3765_p8 }
  0xa4   : > { %p3451_p13 = pneg %p3450_p3 }
  0xa6   : > { %p3456_p2 = pnand %p3454_p0, %p3451_p13 }
  0xa8   : > { %3459 = shalt.err (!%p3456_p2)
}
  0xa9   : > { %s3460_s27 = scalar_lea.vmem %s464_s5, 1024  ;;  %p3468_p4 = scmp.lt.s32.totalorder %s464_s5, %s464_s5 }
  0xaa   : > { %p3461_p5 = scmp.ne.s32.totalorder %s464_s5, %s3460_s27  ;;  %p3469_p10 = scmp.lt.s32.totalorder %s3460_s27, %s3460_s27 }
  0xac   : > { %p3463_p7 = pnand %p3461_p5, %p3765_p8  ;;  %p3470_p11 = por %p3469_p10, %p3468_p4 }
  0xae   : > { %p3464_p9 = pneg %p3463_p7 }
  0xb0   : > { %p3471_p12 = pnand %p3470_p11, %p3464_p9 }
  0xb2   : > { %3474 = shalt.err (!%p3471_p12)
}
  0xb3   : > { %3190 = dma.hbm_to_vmem [thread:$0]  (!%p3749_p6), %s4431_s12, 1024, %s464_s5, [#allocation15], %s3626_s26, %s3626_s26, %s3627_s13  }
  0xb4   : > { %s2623_s23 = sadd.s32 4294967294, %s3621_s16   ;;  %s3906_s21 = sadd.s32 1, %s3621_s16  }
  0xb5   : > { %s40_s25 = ssub.s32 %s3621_s16, %s3906_s21  ;;  %s43_s2 = sadd.s32 1, %s3617_s15 }
  0xb6   : > { %p41_p8 = scmp.eq.s32.totalorder %s40_s25, 0  ;;  %p50_p1 = scmp.ne.s32.totalorder %s3617_s15, %s3613_s30 }
  0xb7   : > { %p51_p3 = scmp.eq.s32.totalorder %s3621_s16, 0  ;;  %p56_p13 = scmp.ne.s32.totalorder %s3613_s30, %s3609_s29 }
  0xb8   : > { %s3917_s7 = scalar_select %p41_p8, %s3617_s15, %s43_s2  }
  0xb9   : > { %p3919_p0 = por %p51_p3, %p50_p1  ;;  %p4458_p2 = scmp.eq.s32.totalorder %s3733_s19, 0 }
  0xba   : > { %p358_p5 = scmp.eq.s32.totalorder %s3733_s19, 1  ;;  %p364_p7 = scmp.eq.s32.totalorder %s2623_s23, 1 }
  0xbb   : > { %p3925_p6 = por %p4458_p2, %p56_p13  ;;  %p3208_p9 = scmp.lt.s32.totalorder %s3621_s16, 2 }
  0xbc   : > { %s480_s13 = sand.u32 1, %s3617_s15   ;;  %p3932_p4 = por %p358_p5, %p50_p1 }
  0xbd   : > { %p3936_p10 = por %p364_p7, %p56_p13  ;;  %s3940_s17 = sshll.u32 %s480_s13, 8 }
  0xbe   : > { %s4460_s5 = scalar_select %p3932_p4, 1, 0 }
  0xbf   : > { %s4461_s28 = scalar_select %p3936_p10, 1, 0 }
  0xc0   : > { %s4437_s24 = sshll.u32 %s3621_s16, 12  ;;  %s4462_s0 = sld [smem:[#allocation24_spill]] }
  0xc1   : > { %s484_s18 = scalar_lea.vmem [#allocation2], %s3940_s17  ;;  %p3955_p11 = pnand %p3208_p9, %p3919_p0 }
  0xc2   : > { %s491_s9 = sshll.u32 %s484_s18, 4  ;;  %s3959_s25 = scalar_lea.sflag [#allocation3], %s480_s13  ;;  %s3951_s9 = int_to_ptr.vmem [resolvable:$true] %s491_s9 }
  0xc3   : > { %p3477_p8 = pneg %p3955_p11 }
  0xc6   : > { %s3948_s27 = scalar_lea.hbm %s4462_s0, %s4437_s24  ;;  %s3480_s11 = scalar_lea.hbm %s4462_s0, 8192 }
  0xc7   : > { %s3475_s2 = scalar_lea.hbm %s3948_s27, 4096  ;;  %p3481_p13 = scmp.lt.u32.totalorder %s3948_s27, %s4462_s0 }
  0xc8   : > { %p3476_p12 = scmp.ne.s32.totalorder %s3948_s27, %s3475_s2  ;;  %p3482_p0 = scmp.lt.u32.totalorder %s3480_s11, %s3475_s2 }
  0xc9   : > { %p3484_p5 = scmp.lt.u32.totalorder %s3475_s2, %s3948_s27 }
  0xca   : > { %p3478_p1 = pnand %p3477_p8, %p3476_p12  ;;  %p3483_p2 = por %p3482_p0, %p3481_p13 }
  0xcc   : > { %p3479_p3 = pneg %p3478_p1  ;;  %p3485_p7 = por %p3484_p5, %p3483_p2 }
  0xce   : > { %p3486_p9 = pnand %p3485_p7, %p3479_p3 }
  0xd0   : > { %3489 = shalt.err (!%p3486_p9)
}
  0xd1   : > { %s3490_s13 = scalar_lea.vmem %s3951_s9, 4096  ;;  %s3631_s14 = smov [#allocation2]  }
  0xd2   : > { %p3491_p12 = scmp.ne.s32.totalorder %s3951_s9, %s3490_s13  ;;  %s3495_s22 = sshll.u32 %s3631_s14, 4  ;;  %s3496_s22 = int_to_ptr.vmem [resolvable:$false] %s3495_s22 }
  0xd3   : > { %s3497_s24 = scalar_lea.vmem %s3496_s22, 8192  ;;  %p3498_p4 = scmp.lt.s32.totalorder %s3951_s9, %s3496_s22 }
  0xd4   : > { %p3493_p1 = pnand %p3491_p12, %p3477_p8  ;;  %p3499_p13 = scmp.lt.s32.totalorder %s3497_s24, %s3490_s13 }
  0xd6   : > { %p3494_p10 = pneg %p3493_p1  ;;  %p3500_p0 = por %p3499_p13, %p3498_p4 }
  0xd8   : > { %p3501_p2 = pnand %p3500_p0, %p3494_p10 }
  0xda   : > { %3504 = shalt.err (!%p3501_p2)
}
  0xdb   : > { %s3632_s2 = smov 128   ;;  %s3633_s11 = smov 8  }
  0xdc   : > { %3194 = dma.hbm_to_vmem [thread:$0]  (!%p3955_p11), %s3948_s27, 4096, %s3951_s9, %s3959_s25, %s3632_s2, %s3632_s2, %s3633_s11  }
  0xdd   : > { %s4464_s18 = sshll.u32 %s3621_s16, 12  ;;  %s505_s24 = scalar_lea.vmem [#allocation5], %s3940_s17 }
  0xde   : > { %s3995_s22 = scalar_lea.hbm %s4420_s1, %s4464_s18  ;;  %s512_s0 = sshll.u32 %s505_s24, 4  ;;  %s3998_s0 = int_to_ptr.vmem [resolvable:$true] %s512_s0 }
  0xdf   : > { %s501_s4 = sand.u32 1, %s3621_s16   ;;  %s3505_s8 = scalar_lea.hbm %s3995_s22, 4096 }
  0xe0   : > { %s4001_s6 = scalar_lea.sflag [#allocation6], %s501_s4  ;;  %p3506_p4 = scmp.ne.s32.totalorder %s3995_s22, %s3505_s8 }
  0xe1   : > { %s3510_s25 = scalar_lea.hbm %s4420_s1, 8192  ;;  %p3511_p5 = scmp.lt.u32.totalorder %s3995_s22, %s4420_s1 }
  0xe2   : > { %p3508_p10 = pnand %p3506_p4, %p3477_p8  ;;  %p3512_p7 = scmp.lt.u32.totalorder %s3510_s25, %s3505_s8 }
  0xe3   : > { %p3514_p12 = scmp.lt.u32.totalorder %s3505_s8, %s3995_s22 }
  0xe4   : > { %p3509_p3 = pneg %p3508_p10  ;;  %p3513_p9 = por %p3512_p7, %p3511_p5 }
  0xe6   : > { %p3515_p1 = por %p3514_p12, %p3513_p9 }
  0xe8   : > { %p3516_p13 = pnand %p3515_p1, %p3509_p3 }
  0xea   : > { %3519 = shalt.err (!%p3516_p13)
}
  0xeb   : > { %s3520_s4 = scalar_lea.vmem %s3998_s0, 4096  ;;  %s3634_s17 = smov [#allocation5]  }
  0xec   : > { %p3521_p0 = scmp.ne.s32.totalorder %s3998_s0, %s3520_s4  ;;  %s3525_s14 = sshll.u32 %s3634_s17, 4  ;;  %s3526_s14 = int_to_ptr.vmem [resolvable:$false] %s3525_s14 }
  0xed   : > { %s3527_s24 = scalar_lea.vmem %s3526_s14, 8192  ;;  %p3528_p10 = scmp.lt.s32.totalorder %s3998_s0, %s3526_s14 }
  0xee   : > { %p3523_p2 = pnand %p3521_p0, %p3477_p8  ;;  %p3529_p5 = scmp.lt.s32.totalorder %s3527_s24, %s3520_s4 }
  0xf0   : > { %p3524_p4 = pneg %p3523_p2  ;;  %p3530_p7 = por %p3529_p5, %p3528_p10 }
  0xf2   : > { %p3531_p9 = pnand %p3530_p7, %p3524_p4 }
  0xf4   : > { %3534 = shalt.err (!%p3531_p9)
}
  0xf5   : > { %3197 = dma.hbm_to_vmem [thread:$0]  (!%p3955_p11), %s3995_s22, 4096, %s3998_s0, %s4001_s6, %s3632_s2, %s3632_s2, %s3633_s11  }
  0xf6   : > { %p4465_p8 = scmp.ne.s32.totalorder %s4450_s20, 0 }
  0xf7   : > { %s4033_s8 = sand.u32 (!%p4465_p8), 1, %s3613_s30  }
  0xf8   : > { %524 = sbr.rel (%p4465_p8) target bundleno = 1222 (0x4c6), region = 76  ;;  %s2639_s27 = sshll.u32 (!%p4465_p8), %s4033_s8, 8 }
  0xf9   : > { %s527_s9 = scalar_lea.sflag (!%p4465_p8), [#allocation3], %s4033_s8  ;;  %s4037_s25 = scalar_lea.vmem (!%p4465_p8), [#allocation2], %s2639_s27 }
  0xff   : > { %3580 = dma.done.wait (%p3925_p6), %s527_s9, 4096  }
 0x100   : > { %3582 = vsyncadd (%p3925_p6), %s527_s9, 4294963200  ;;  %s535_s0 = sand.u32 1, %s3733_s19   ;;  %s4044_s20 = scalar_lea.vmem [#allocation5], %s2639_s27 }
 0x101   : > { %s536_s6 = scalar_lea.sflag [#allocation6], %s535_s0 }
 0x102   : > { %3584 = dma.done.wait (%p3925_p6), %s536_s6, 4096  }
 0x103   : > { %3586 = vsyncadd (%p3925_p6), %s536_s6, 4294963200  ;;  %p4466_p11 = scmp.eq.s32.totalorder %s3733_s19, 0 }
 0x105   : > { %3588 = dma.done.wait (%p4466_p11), [#allocation6], 1024   ;;  %p4467_p3 = pmov %p4466_p11 }
 0x107   : > { %3590 = vsyncadd (%p4467_p3), [#allocation6], 4294966272  ;;  %p4468_p12 = pmov %p4467_p3 }
 0x108   : > { %p4469_p1 = pmov %p4467_p3 }
 0x109   : > { %3592 = dma.done.wait (%p4468_p12), [#allocation9], 2048  }
 0x10a   : > { %3594 = vsyncadd (%p4469_p1), [#allocation9], 4294965248  ;;  %p4470_p13 = pmov %p4469_p1 }
 0x10b   : > { %p4471_p0 = pmov %p4469_p1 }
 0x10c   : > { %3596 = dma.done.wait (%p4470_p13), [#allocation12], 2048  }
 0x10d   : > { %3598 = vsyncadd (%p4471_p0), [#allocation12], 4294965248  ;;  %p4472_p6 = pmov %p4471_p0 }
 0x10e   : > { %p4473_p2 = pmov %p4471_p0 }
 0x10f   : > { %3600 = dma.done.wait (%p4472_p6), [#allocation15], 1024  }
 0x110   : > { %3602 = vsyncadd (%p4473_p2), [#allocation15], 4294966272  ;;  %v3259_v0 = vld [vmem:[#allocation7] sm:$0xff]   ;;  %v3261_v2 = vld [vmem:[#allocation7 + $0x8] sm:$0xff]   ;;  %s4474_s22 = sld [smem:[#allocation27_spill]]  ;;  %s4475_s4 = sld [smem:[#allocation29_spill]] }
 0x111   : > { %v3260_v1 = vld [vmem:[#allocation8] sm:$0xff]   ;;  %2854 = vmatprep.subr.bf16.mxu0 %v3259_v0  ;;  %v3262_v3 = vld [vmem:[#allocation8 + $0x8] sm:$0xff]   ;;  %v3263_v4 = vld [vmem:[#allocation7 + $0x10] sm:$0xff]   ;;  %s4476_s24 = sld [smem:[#allocation31_spill]]  ;;  %s2647_s26 = sshll.u32 %s4033_s8, 1 }
 0x112   : > { %2902 = vmatprep.subr.bf16.mxu1 %v3260_v1  ;;  %2855 = vmatpush3.bf16.msra.mxu0 %v3259_v0  ;;  %v3264_v5 = vld [vmem:[#allocation8 + $0x10] sm:$0xff]   ;;  %v3265_v6 = vld [vmem:[#allocation7 + $0x18] sm:$0xff]   ;;  %v3267_v8 = vld [vmem:[#allocation7 + $0x20] sm:$0xff]   ;;  %s2709_s23 = sshll.u32 %s3733_s19, 5  ;;  %s612_s2 = scalar_lea.vmem [#allocation16], %s2647_s26 }
 0x113   : > { %2903 = vmatpush3.bf16.msra.mxu1 %v3260_v1  ;;  %2856 = vmatprep.subr.bf16.mxu0 %v3261_v2  ;;  %v3266_v7 = vld [vmem:[#allocation8 + $0x18] sm:$0xff]   ;;  %v3268_v9 = vld [vmem:[#allocation8 + $0x20] sm:$0xff]   ;;  %v3269_v10 = vld [vmem:[#allocation7 + $0x28] sm:$0xff]   ;;  %s2473_s11 = sshll.u32 %s612_s2, 4  ;;  %s4479_s13 = sld [smem:[#allocation34_spill]]  ;;  %s4377_s11 = int_to_ptr.vmem [resolvable:$true] %s2473_s11 }
 0x114   : > { %2904 = vmatprep.subr.bf16.mxu1 %v3262_v3  ;;  %v617_v11 = vld [vmem:[%s4037_s25] sm:$0xff]  ;;  %v618_v12 = vld [vmem:[%s4037_s25 + $0x8] sm:$0xff]  ;;  %v3271_v18 = vld [vmem:[#allocation7 + $0x30] sm:$0xff]   ;;  %s2459_s17 = scalar_lea.sflag [#allocation4], %s4033_s8  ;;  %s3535_s14 = scalar_lea.vmem %s4377_s11, 32 }
 0x115   : > { %v665_v13 = vld [vmem:[%s4044_s20] sm:$0xff]  ;;  %v3270_v14 = vld [vmem:[#allocation8 + $0x28] sm:$0xff]   ;;  %v649_v15 = vpack.c.bf16 %v618_v12, %v617_v11  ;;  %v3272_v19 = vld [vmem:[#allocation8 + $0x30] sm:$0xff]   ;;  %p3536_p4 = scmp.ne.s32.totalorder %s4377_s11, %s3535_s14  ;;  %p4480_p10 = scmp.ne.s32.totalorder %s4460_s5, 0 }
 0x116   : > { %2857 = vmatpush3.bf16.msra.mxu0 %v3261_v2  ;;  %v666_v16 = vld [vmem:[%s4044_s20 + $0x8] sm:$0xff]  ;;  %v3273_v20 = vld [vmem:[#allocation7 + $0x38] sm:$0xff]   ;;  %v619_v22 = vld [vmem:[%s4037_s25 + $0x10] sm:$0xff]  ;;  %s3636_s19 = smov [#allocation16]  }
 0x117   : > { %2905 = vmatpush3.bf16.msra.mxu1 %v3262_v3  ;;  %2858 = vmatprep.subr.bf16.mxu0 %v3263_v4  ;;  %v697_v17 = vpack.c.bf16 %v666_v16, %v665_v13  ;;  %v3274_v21 = vld [vmem:[#allocation8 + $0x38] sm:$0xff]   ;;  %v667_v24 = vld [vmem:[%s4044_s20 + $0x10] sm:$0xff]  ;;  %v621_v26 = vld [vmem:[%s4037_s25 + $0x20] sm:$0xff]  ;;  %p3537_p5 = pnand %p3536_p4, %p4480_p10 }
 0x118   : > { %2906 = vmatprep.subr.bf16.mxu1 %v3264_v5  ;;  %2870 = vmatprep.mubr.bf16.mxu0 %v649_v15  ;;  %v620_v23 = vld [vmem:[%s4037_s25 + $0x18] sm:$0xff]  ;;  %v622_v27 = vld [vmem:[%s4037_s25 + $0x28] sm:$0xff]  ;;  %v669_v28 = vld [vmem:[%s4044_s20 + $0x20] sm:$0xff] }
 0x119   : > { %2918 = vmatprep.mubr.bf16.mxu1 %v697_v17  ;;  %v668_v25 = vld [vmem:[%s4044_s20 + $0x18] sm:$0xff]  ;;  %v670_v29 = vld [vmem:[%s4044_s20 + $0x28] sm:$0xff]  ;;  %v650_v30 = vpack.c.bf16 %v620_v23, %v619_v22  ;;  %v651_v32 = vpack.c.bf16 %v622_v27, %v621_v26  ;;  %v623_v34 = vld [vmem:[%s4037_s25 + $0x30] sm:$0xff]  ;;  %p3538_p7 = pneg %p3537_p5 }
 0x11a   : > { %2859 = vmatpush3.bf16.msra.mxu0 %v3263_v4  ;;  %v698_v31 = vpack.c.bf16 %v668_v25, %v667_v24  ;;  %v699_v33 = vpack.c.bf16 %v670_v29, %v669_v28  ;;  %v624_v35 = vld [vmem:[%s4037_s25 + $0x38] sm:$0xff]  ;;  %v671_v36 = vld [vmem:[%s4044_s20 + $0x30] sm:$0xff]  ;;  %v625_v38 = vld [vmem:[%s4037_s25 + $0x40] sm:$0xff] }
 0x11b   : > { %2907 = vmatpush3.bf16.msra.mxu1 %v3264_v5  ;;  %2860 = vmatprep.subr.bf16.mxu0 %v3265_v6  ;;  %v672_v37 = vld [vmem:[%s4044_s20 + $0x38] sm:$0xff]  ;;  %v626_v39 = vld [vmem:[%s4037_s25 + $0x48] sm:$0xff]  ;;  %v673_v40 = vld [vmem:[%s4044_s20 + $0x40] sm:$0xff]  ;;  %v652_v42 = vpack.c.bf16 %v624_v35, %v623_v34 }
 0x11c   : > { %2908 = vmatprep.subr.bf16.mxu1 %v3266_v7  ;;  %v674_v41 = vld [vmem:[%s4044_s20 + $0x48] sm:$0xff]  ;;  %v3275_v43 = vld [vmem:[#allocation10] sm:$0xff]   ;;  %v700_v44 = vpack.c.bf16 %v672_v37, %v671_v36  ;;  %v653_v45 = vpack.c.bf16 %v626_v39, %v625_v38  ;;  %v627_v49 = vld [vmem:[%s4037_s25 + $0x50] sm:$0xff] }
 0x11d   : > { %v3276_v46 = vld [vmem:[#allocation11] sm:$0xff]   ;;  %v701_v47 = vpack.c.bf16 %v674_v41, %v673_v40  ;;  %v3277_v48 = vld [vmem:[#allocation10 + $0x8] sm:$0xff]   ;;  %v628_v50 = vld [vmem:[%s4037_s25 + $0x58] sm:$0xff] }
 0x11e   : > { %2861 = vmatpush3.bf16.msra.mxu0 %v3265_v6  ;;  %v3278_v51 = vld [vmem:[#allocation11 + $0x8] sm:$0xff]   ;;  %v675_v52 = vld [vmem:[%s4044_s20 + $0x50] sm:$0xff]  ;;  %v676_v53 = vld [vmem:[%s4044_s20 + $0x58] sm:$0xff]  ;;  %v654_v60 = vpack.c.bf16 %v628_v50, %v627_v49 }
 0x11f   : > { %2909 = vmatpush3.bf16.msra.mxu1 %v3266_v7  ;;  %2862 = vmatprep.subr.bf16.mxu0 %v3267_v8  ;;  %v629_v54 = vld [vmem:[%s4037_s25 + $0x60] sm:$0xff]  ;;  %v630_v55 = vld [vmem:[%s4037_s25 + $0x68] sm:$0xff]  ;;  %v3279_v56 = vld [vmem:[#allocation10 + $0x10] sm:$0xff]   ;;  %v702_v61 = vpack.c.bf16 %v676_v53, %v675_v52 }
 0x120   : > { %2910 = vmatprep.subr.bf16.mxu1 %v3268_v9  ;;  %v3280_v57 = vld [vmem:[#allocation11 + $0x10] sm:$0xff]   ;;  %v677_v58 = vld [vmem:[%s4044_s20 + $0x60] sm:$0xff]  ;;  %v678_v59 = vld [vmem:[%s4044_s20 + $0x68] sm:$0xff]  ;;  %v655_v62 = vpack.c.bf16 %v630_v55, %v629_v54 }
 0x121   : > { %v703_v63 = vpack.c.bf16 %v678_v59, %v677_v58  ;;  %v3281_v0 = vld [vmem:[#allocation10 + $0x18] sm:$0xff]   ;;  %v631_v1 = vld [vmem:[%s4037_s25 + $0x70] sm:$0xff]  ;;  %v633_v6 = vld [vmem:[%s4037_s25 + $0x80] sm:$0xff] }
 0x122   : > { %2863 = vmatpush3.bf16.msra.mxu0 %v3267_v8  ;;  %v632_v2 = vld [vmem:[%s4037_s25 + $0x78] sm:$0xff]  ;;  %v679_v4 = vld [vmem:[%s4044_s20 + $0x70] sm:$0xff]  ;;  %v634_v7 = vld [vmem:[%s4037_s25 + $0x88] sm:$0xff] }
 0x123   : > { %2911 = vmatpush3.bf16.msra.mxu1 %v3268_v9  ;;  %2864 = vmatprep.subr.bf16.mxu0 %v3269_v10  ;;  %v3282_v3 = vld [vmem:[#allocation11 + $0x18] sm:$0xff]   ;;  %v3283_v8 = vld [vmem:[#allocation10 + $0x20] sm:$0xff]   ;;  %v656_v12 = vpack.c.bf16 %v632_v2, %v631_v1  ;;  %v3285_v13 = vld [vmem:[#allocation10 + $0x28] sm:$0xff]   ;;  %v657_v15 = vpack.c.bf16 %v634_v7, %v633_v6 }
 0x124   : > { %2912 = vmatprep.subr.bf16.mxu1 %v3270_v14  ;;  %v680_v5 = vld [vmem:[%s4044_s20 + $0x78] sm:$0xff]  ;;  %v681_v9 = vld [vmem:[%s4044_s20 + $0x80] sm:$0xff]  ;;  %v3286_v16 = vld [vmem:[#allocation11 + $0x28] sm:$0xff]  }
 0x125   : > { %v3284_v11 = vld [vmem:[#allocation11 + $0x20] sm:$0xff]   ;;  %v683_v22 = vld [vmem:[%s4044_s20 + $0x90] sm:$0xff]  ;;  %v684_v23 = vld [vmem:[%s4044_s20 + $0x98] sm:$0xff] }
 0x126   : > { %2865 = vmatpush3.bf16.msra.mxu0 %v3269_v10  ;;  %v682_v10 = vld [vmem:[%s4044_s20 + $0x88] sm:$0xff]  ;;  %v637_v24 = vld [vmem:[%s4037_s25 + $0xa0] sm:$0xff]  ;;  %v706_v29 = vpack.c.bf16 %v684_v23, %v683_v22  ;;  %v687_v34 = vld [vmem:[%s4044_s20 + $0xb0] sm:$0xff] }
 0x127   : > { %2913 = vmatpush3.bf16.msra.mxu1 %v3270_v14  ;;  %2866 = vmatprep.subr.bf16.mxu0 %v3271_v18  ;;  %v704_v14 = vpack.c.bf16 %v680_v5, %v679_v4  ;;  %v705_v17 = vpack.c.bf16 %v682_v10, %v681_v9  ;;  %v638_v25 = vld [vmem:[%s4037_s25 + $0xa8] sm:$0xff]  ;;  %v685_v26 = vld [vmem:[%s4044_s20 + $0xa0] sm:$0xff]  ;;  %v688_v35 = vld [vmem:[%s4044_s20 + $0xb8] sm:$0xff] }
 0x128   : > { %2914 = vmatprep.subr.bf16.mxu1 %v3272_v19  ;;  %v686_v27 = vld [vmem:[%s4044_s20 + $0xa8] sm:$0xff]  ;;  %v641_v36 = vld [vmem:[%s4037_s25 + $0xc0] sm:$0xff]  ;;  %v708_v41 = vpack.c.bf16 %v688_v35, %v687_v34  ;;  %v695_v58 = vld [vmem:[%s4044_s20 + $0xf0] sm:$0xff] }
 0x129   : > { %v642_v37 = vld [vmem:[%s4037_s25 + $0xc8] sm:$0xff]  ;;  %v689_v38 = vld [vmem:[%s4044_s20 + $0xc0] sm:$0xff]  ;;  %v696_v59 = vld [vmem:[%s4044_s20 + $0xf8] sm:$0xff] }
 0x12a   : > { %2867 = vmatpush3.bf16.msra.mxu0 %v3271_v18  ;;  %v3287_v18 = vld [vmem:[#allocation10 + $0x30] sm:$0xff]   ;;  %v690_v39 = vld [vmem:[%s4044_s20 + $0xc8] sm:$0xff]  ;;  %v693_v50 = vld [vmem:[%s4044_s20 + $0xe0] sm:$0xff] }
 0x12b   : > { %2915 = vmatpush3.bf16.msra.mxu1 %v3272_v19  ;;  %2868 = vmatprep.subr.bf16.mxu0 %v3273_v20  ;;  %v635_v19 = vld [vmem:[%s4037_s25 + $0x90] sm:$0xff]  ;;  %v646_v49 = vld [vmem:[%s4037_s25 + $0xe8] sm:$0xff]  ;;  %v3292_v1 = vld [vmem:[#allocation14] sm:$0xff]  }
 0x12c   : > { %2916 = vmatprep.subr.bf16.mxu1 %v3274_v21  ;;  %v4133_v2 = vld [vmem:[%s4422_s3] ss:$0 sm:$0xff] }
 0x12e   : > { %2869 = vmatpush3.bf16.msra.mxu0 %v3273_v20  ;;  %v636_v20 = vld [vmem:[%s4037_s25 + $0x98] sm:$0xff] }
 0x12f   : > { %2917 = vmatpush3.bf16.msra.mxu1 %v3274_v21  ;;  %2950 = vmatprep.subr.bf16.mxu0 %v3275_v43  ;;  %v3288_v21 = vld [vmem:[#allocation11 + $0x30] sm:$0xff]   ;;  %v658_v28 = vpack.c.bf16 %v636_v20, %v635_v19 }
 0x130   : > { %2998 = vmatprep.subr.bf16.mxu1 %v3276_v46 }
 0x131   : > { %2871 = vmatmul.mubr.bf16.vlgmr.msra.gmra.mrb[0].mxu0 %v650_v30  ;;  %v659_v30 = vpack.c.bf16 %v638_v25, %v637_v24 }
 0x132   : > { %2919 = vmatmul.mubr.bf16.vlgmr.msra.gmra.mrb[0].mxu1 %v698_v31  ;;  %2874 = vmatprep.mubr.bf16.mxu0 %v651_v32  ;;  %v707_v31 = vpack.c.bf16 %v686_v27, %v685_v26  ;;  %v639_v32 = vld [vmem:[%s4037_s25 + $0xb0] sm:$0xff] }
 0x133   : > { %2922 = vmatprep.mubr.bf16.mxu1 %v699_v33  ;;  %2951 = vmatpush3.bf16.msra.mxu0 %v3275_v43  ;;  %v640_v33 = vld [vmem:[%s4037_s25 + $0xb8] sm:$0xff]  ;;  %v709_v43 = vpack.c.bf16 %v690_v39, %v689_v38 }
 0x134   : > { %2999 = vmatpush3.bf16.msra.mxu1 %v3276_v46  ;;  %2952 = vmatprep.subr.bf16.mxu0 %v3277_v48  ;;  %v660_v40 = vpack.c.bf16 %v640_v33, %v639_v32  ;;  %v691_v46 = vld [vmem:[%s4044_s20 + $0xd0] sm:$0xff] }
 0x135   : > { %3000 = vmatprep.subr.bf16.mxu1 %v3278_v51 }
 0x137   : > { %2953 = vmatpush3.bf16.msra.mxu0 %v3277_v48  ;;  %v645_v48 = vld [vmem:[%s4037_s25 + $0xe0] sm:$0xff] }
 0x138   : > { %3001 = vmatpush3.bf16.msra.mxu1 %v3278_v51  ;;  %2954 = vmatprep.subr.bf16.mxu0 %v3279_v56  ;;  %v694_v51 = vld [vmem:[%s4044_s20 + $0xe8] sm:$0xff]  ;;  %v663_v54 = vpack.c.bf16 %v646_v49, %v645_v48 }
 0x139   : > { %2875 = vmatmul.mubr.bf16.gmra.mrb[4].mxu0 %v652_v42  ;;  %3002 = vmatprep.subr.bf16.mxu1 %v3280_v57  ;;  %v661_v42 = vpack.c.bf16 %v642_v37, %v641_v36  ;;  %v711_v55 = vpack.c.bf16 %v694_v51, %v693_v50  ;;  %v3293_v36 = vld [vmem:[#allocation13 + $0x8] sm:$0xff]  }
 0x13a   : > { %2923 = vmatmul.mubr.bf16.gmra.mrb[4].mxu1 %v700_v44  ;;  %2878 = vmatprep.mubr.bf16.mxu0 %v653_v45  ;;  %v643_v44 = vld [vmem:[%s4037_s25 + $0xd0] sm:$0xff]  ;;  %v644_v45 = vld [vmem:[%s4037_s25 + $0xd8] sm:$0xff] }
 0x13b   : > { %2926 = vmatprep.mubr.bf16.mxu1 %v701_v47  ;;  %2955 = vmatpush3.bf16.msra.mxu0 %v3279_v56  ;;  %v692_v47 = vld [vmem:[%s4044_s20 + $0xd8] sm:$0xff]  ;;  %v662_v52 = vpack.c.bf16 %v644_v45, %v643_v44  ;;  %v647_v56 = vld [vmem:[%s4037_s25 + $0xf0] sm:$0xff]  ;;  %s4478_s20 = sld [smem:[#allocation33_spill]] }
 0x13c   : > { %3003 = vmatpush3.bf16.msra.mxu1 %v3280_v57  ;;  %2956 = vmatprep.subr.bf16.mxu0 %v3281_v0  ;;  %v710_v53 = vpack.c.bf16 %v692_v47, %v691_v46  ;;  %v648_v57 = vld [vmem:[%s4037_s25 + $0xf8] sm:$0xff]  ;;  %s4477_s25 = sld [smem:[#allocation32_spill]] }
 0x13d   : > { %3004 = vmatprep.subr.bf16.mxu1 %v3282_v3 }
 0x13f   : > { %2957 = vmatpush3.bf16.msra.mxu0 %v3281_v0  ;;  %v3291_v0 = vld [vmem:[#allocation13] sm:$0xff]  }
 0x140   : > { %3005 = vmatpush3.bf16.msra.mxu1 %v3282_v3  ;;  %2958 = vmatprep.subr.bf16.mxu0 %v3283_v8  ;;  %v4138_v3 = vld [vmem:[%s4474_s22] ss:$0 sm:$0xff] }
 0x141   : > { %2879 = vmatmul.mubr.bf16.gmra.mrb[8].mxu0 %v654_v60  ;;  %3006 = vmatprep.subr.bf16.mxu1 %v3284_v11  ;;  %v664_v60 = vpack.c.bf16 %v648_v57, %v647_v56  ;;  %v3296_v57 = vld [vmem:[#allocation14 + $0x10] sm:$0xff]  }
 0x142   : > { %2927 = vmatmul.mubr.bf16.gmra.mrb[8].mxu1 %v702_v61  ;;  %2882 = vmatprep.mubr.bf16.mxu0 %v655_v62  ;;  %v712_v61 = vpack.c.bf16 %v696_v59, %v695_v58  ;;  %v3289_v62 = vld [vmem:[#allocation10 + $0x38] sm:$0xff]  }
 0x143   : > { %2930 = vmatprep.mubr.bf16.mxu1 %v703_v63  ;;  %2959 = vmatpush3.bf16.msra.mxu0 %v3283_v8  ;;  %v3290_v63 = vld [vmem:[#allocation11 + $0x38] sm:$0xff]  }
 0x144   : > { %3007 = vmatpush3.bf16.msra.mxu1 %v3284_v11  ;;  %2960 = vmatprep.subr.bf16.mxu0 %v3285_v13 }
 0x145   : > { %3008 = vmatprep.subr.bf16.mxu1 %v3286_v16 }
 0x147   : > { %2961 = vmatpush3.bf16.msra.mxu0 %v3285_v13 }
 0x148   : > { %3009 = vmatpush3.bf16.msra.mxu1 %v3286_v16  ;;  %2962 = vmatprep.subr.bf16.mxu0 %v3287_v18 }
 0x149   : > { %2883 = vmatmul.mubr.bf16.gmra.mrb[12].mxu0 %v656_v12  ;;  %3010 = vmatprep.subr.bf16.mxu1 %v3288_v21 }
 0x14a   : > { %2931 = vmatmul.mubr.bf16.gmra.mrb[12].mxu1 %v704_v14  ;;  %2886 = vmatprep.mubr.bf16.mxu0 %v657_v15 }
 0x14b   : > { %2934 = vmatprep.mubr.bf16.mxu1 %v705_v17  ;;  %2963 = vmatpush3.bf16.msra.mxu0 %v3287_v18 }
 0x14c   : > { %3011 = vmatpush3.bf16.msra.mxu1 %v3288_v21  ;;  %2964 = vmatprep.subr.bf16.mxu0 %v3289_v62 }
 0x14d   : > { %3012 = vmatprep.subr.bf16.mxu1 %v3290_v63 }
 0x14f   : > { %2965 = vmatpush3.bf16.msra.mxu0 %v3289_v62 }
 0x150   : > { %3013 = vmatpush3.bf16.msra.mxu1 %v3290_v63  ;;  %3046 = vmatprep.subr.bf16.mxu0 %v3291_v0 }
 0x151   : > { %2887 = vmatmul.mubr.bf16.gmra.mrb[16].mxu0 %v658_v28  ;;  %3094 = vmatprep.subr.bf16.mxu1 %v3292_v1 }
 0x152   : > { %2935 = vmatmul.mubr.bf16.gmra.mrb[16].mxu1 %v706_v29  ;;  %2890 = vmatprep.mubr.bf16.mxu0 %v659_v30 }
 0x153   : > { %2938 = vmatprep.mubr.bf16.mxu1 %v707_v31 }
 0x159   : > { %2891 = vmatmul.mubr.bf16.gmra.mrb[20].mxu0 %v660_v40 }
 0x15a   : > { %2939 = vmatmul.mubr.bf16.gmra.mrb[20].mxu1 %v708_v41  ;;  %2894 = vmatprep.mubr.bf16.mxu0 %v661_v42  ;;  %v3294_v41 = vld [vmem:[#allocation14 + $0x8] sm:$0xff]  }
 0x15b   : > { %2942 = vmatprep.mubr.bf16.mxu1 %v709_v43 }
 0x161   : > { %2895 = vmatmul.mubr.bf16.gmra.mrb[24].mxu0 %v662_v52  ;;  %v3295_v52 = vld [vmem:[#allocation13 + $0x10] sm:$0xff]  }
 0x162   : > { %2943 = vmatmul.mubr.bf16.gmra.mrb[24].mxu1 %v710_v53  ;;  %2898 = vmatprep.mubr.bf16.mxu0 %v663_v54 }
 0x163   : > { %2946 = vmatprep.mubr.bf16.mxu1 %v711_v55 }
 0x169   : > { %2899 = vmatmul.mubr.bf16.gmra.mrb[28].mxu0 %v664_v60 }
 0x16a   : > { %2947 = vmatmul.mubr.bf16.gmra.mrb[28].mxu1 %v712_v61 }
 0x204   : > { %v2872_v4 = vpop.f32.mrb[0].mxu0 }
 0x205   : > { %v827_v5 = vadd.f32 %v2872_v4, %v4133_v2  ;;  %v2920_v6 = vpop.f32.mrb[0].mxu1  ;;  %v818_v7 = vpop.f32.mrb[1].mxu0 }
 0x206   : > { %v1059_v8 = vadd.f32 %v2920_v6, %v4138_v3  ;;  %v819_v9 = vadd.f32 %v4133_v2, %v818_v7  ;;  %v1050_v10 = vpop.f32.mrb[1].mxu1  ;;  %v2873_v11 = vpop.f32.mrb[2].mxu0  ;;  %v3297_v6 = vld [vmem:[#allocation13 + $0x18] sm:$0xff]  }
 0x207   : > { %v1051_v12 = vadd.f32 %v4138_v3, %v1050_v10  ;;  %v830_v13 = vadd.f32 %v2873_v11, %v4133_v2  ;;  %v2921_v14 = vpop.f32.mrb[2].mxu1  ;;  %v821_v15 = vpop.f32.mrb[3].mxu0  ;;  %v1179_v19 = vmax.f32 %v827_v5, 0.0  ;;  %v3298_v11 = vld [vmem:[#allocation14 + $0x18] sm:$0xff]  }
 0x208   : > { %v1062_v16 = vadd.f32 %v2921_v14, %v4138_v3  ;;  %v822_v17 = vadd.f32 %v4133_v2, %v821_v15  ;;  %v1053_v18 = vpop.f32.mrb[3].mxu1  ;;  %v1227_v22 = vmax.f32 %v1059_v8, 0.0  ;;  %v1177_v23 = vmax.f32 %v819_v9, 0.0 }
 0x209   : > { %v1180_v20 = vmax.f32 %v830_v13, 0.0  ;;  %v1054_v21 = vadd.f32 %v4138_v3, %v1053_v18  ;;  %v1225_v26 = vmax.f32 %v1051_v12, 0.0 }
 0x20a   : > { %v1228_v24 = vmax.f32 %v1062_v16, 0.0  ;;  %v1178_v25 = vmax.f32 %v822_v17, 0.0 }
 0x20b   : > { %v1210_v27 = vpack.c.bf16 %v1180_v20, %v1179_v19  ;;  %v1226_v28 = vmax.f32 %v1054_v21, 0.0 }
 0x20c   : > { %v1258_v29 = vpack.c.bf16 %v1228_v24, %v1227_v22  ;;  %v1209_v30 = vpack.c.bf16 %v1178_v25, %v1177_v23  ;;  %v2876_v31 = vpop.f32.mrb[4].mxu0  ;;  %v3299_v22 = vld [vmem:[#allocation13 + $0x20] sm:$0xff]  }
 0x20d   : > { %v1257_v32 = vpack.c.bf16 %v1226_v28, %v1225_v26  ;;  %v843_v33 = vadd.f32 %v2876_v31, %v4133_v2  ;;  %v2924_v34 = vpop.f32.mrb[4].mxu1  ;;  %v834_v35 = vpop.f32.mrb[5].mxu0 }
 0x20e   : > { %v1075_v37 = vadd.f32 %v2924_v34, %v4138_v3  ;;  %v835_v38 = vadd.f32 %v4133_v2, %v834_v35  ;;  %v1066_v39 = vpop.f32.mrb[5].mxu1  ;;  %v2877_v40 = vpop.f32.mrb[6].mxu0  ;;  %2966 = vmatprep.mubr.bf16.mxu0 %v1209_v30 }
 0x20f   : > { %v1067_v42 = vadd.f32 %v4138_v3, %v1066_v39  ;;  %v846_v43 = vadd.f32 %v2877_v40, %v4133_v2  ;;  %v2925_v44 = vpop.f32.mrb[6].mxu1  ;;  %3014 = vmatprep.mubr.bf16.mxu1 %v1257_v32  ;;  %v837_v45 = vpop.f32.mrb[7].mxu0  ;;  %2967 = vmatmul.mubr.bf16.vlgmr.msra.gmra.mrb[32].mxu0 %v1210_v27  ;;  %v1183_v49 = vmax.f32 %v843_v33, 0.0  ;;  %v3300_v27 = vld [vmem:[#allocation14 + $0x20] sm:$0xff]  }
 0x210   : > { %v1078_v46 = vadd.f32 %v2925_v44, %v4138_v3  ;;  %v838_v47 = vadd.f32 %v4133_v2, %v837_v45  ;;  %v1069_v48 = vpop.f32.mrb[7].mxu1  ;;  %3015 = vmatmul.mubr.bf16.vlgmr.msra.gmra.mrb[32].mxu1 %v1258_v29  ;;  %3047 = vmatpush3.bf16.msra.mxu0 %v3291_v0  ;;  %v1231_v53 = vmax.f32 %v1075_v37, 0.0  ;;  %v1181_v54 = vmax.f32 %v835_v38, 0.0  ;;  %v3301_v38 = vld [vmem:[#allocation13 + $0x28] sm:$0xff]  }
 0x211   : > { %v1184_v50 = vmax.f32 %v846_v43, 0.0  ;;  %v1070_v51 = vadd.f32 %v4138_v3, %v1069_v48  ;;  %3095 = vmatpush3.bf16.msra.mxu1 %v3292_v1  ;;  %3048 = vmatprep.subr.bf16.mxu0 %v3293_v36  ;;  %v1229_v58 = vmax.f32 %v1067_v42, 0.0  ;;  %v3302_v43 = vld [vmem:[#allocation14 + $0x28] sm:$0xff]  }
 0x212   : > { %v1232_v55 = vmax.f32 %v1078_v46, 0.0  ;;  %v1182_v56 = vmax.f32 %v838_v47, 0.0  ;;  %3096 = vmatprep.subr.bf16.mxu1 %v3294_v41 }
 0x213   : > { %v1212_v59 = vpack.c.bf16 %v1184_v50, %v1183_v49  ;;  %v1230_v60 = vmax.f32 %v1070_v51, 0.0 }
 0x214   : > { %v1260_v61 = vpack.c.bf16 %v1232_v55, %v1231_v53  ;;  %v1211_v62 = vpack.c.bf16 %v1182_v56, %v1181_v54  ;;  %v2880_v63 = vpop.f32.mrb[8].mxu0  ;;  %3049 = vmatpush3.bf16.msra.mxu0 %v3293_v36  ;;  %v3303_v54 = vld [vmem:[#allocation13 + $0x30] sm:$0xff]  }
 0x215   : > { %v1259_v0 = vpack.c.bf16 %v1230_v60, %v1229_v58  ;;  %v859_v4 = vadd.f32 %v2880_v63, %v4133_v2  ;;  %v2928_v5 = vpop.f32.mrb[8].mxu1  ;;  %v850_v1 = vpop.f32.mrb[9].mxu0  ;;  %3097 = vmatpush3.bf16.msra.mxu1 %v3294_v41  ;;  %3050 = vmatprep.subr.bf16.mxu0 %v3295_v52 }
 0x216   : > { %v1091_v7 = vadd.f32 %v2928_v5, %v4138_v3  ;;  %v851_v8 = vadd.f32 %v4133_v2, %v850_v1  ;;  %v1082_v9 = vpop.f32.mrb[9].mxu1  ;;  %v2881_v10 = vpop.f32.mrb[10].mxu0  ;;  %2970 = vmatprep.mubr.bf16.mxu0 %v1211_v62  ;;  %3098 = vmatprep.subr.bf16.mxu1 %v3296_v57 }
 0x217   : > { %v1083_v12 = vadd.f32 %v4138_v3, %v1082_v9  ;;  %v862_v13 = vadd.f32 %v2881_v10, %v4133_v2  ;;  %v2929_v14 = vpop.f32.mrb[10].mxu1  ;;  %3018 = vmatprep.mubr.bf16.mxu1 %v1259_v0  ;;  %v853_v15 = vpop.f32.mrb[11].mxu0  ;;  %2971 = vmatmul.mubr.bf16.gmra.mrb[36].mxu0 %v1212_v59  ;;  %v1187_v19 = vmax.f32 %v859_v4, 0.0  ;;  %v3304_v59 = vld [vmem:[#allocation14 + $0x30] sm:$0xff]  }
 0x218   : > { %v1094_v16 = vadd.f32 %v2929_v14, %v4138_v3  ;;  %v854_v17 = vadd.f32 %v4133_v2, %v853_v15  ;;  %v1085_v18 = vpop.f32.mrb[11].mxu1  ;;  %3019 = vmatmul.mubr.bf16.gmra.mrb[36].mxu1 %v1260_v61  ;;  %3051 = vmatpush3.bf16.msra.mxu0 %v3295_v52  ;;  %v1235_v23 = vmax.f32 %v1091_v7, 0.0  ;;  %v1185_v24 = vmax.f32 %v851_v8, 0.0 }
 0x219   : > { %v1188_v20 = vmax.f32 %v862_v13, 0.0  ;;  %v1086_v21 = vadd.f32 %v4138_v3, %v1085_v18  ;;  %3099 = vmatpush3.bf16.msra.mxu1 %v3296_v57  ;;  %3052 = vmatprep.subr.bf16.mxu0 %v3297_v6  ;;  %v1233_v28 = vmax.f32 %v1083_v12, 0.0 }
 0x21a   : > { %v1236_v25 = vmax.f32 %v1094_v16, 0.0  ;;  %v1186_v26 = vmax.f32 %v854_v17, 0.0  ;;  %3100 = vmatprep.subr.bf16.mxu1 %v3298_v11 }
 0x21b   : > { %v1214_v29 = vpack.c.bf16 %v1188_v20, %v1187_v19  ;;  %v1234_v30 = vmax.f32 %v1086_v21, 0.0 }
 0x21c   : > { %v1262_v31 = vpack.c.bf16 %v1236_v25, %v1235_v23  ;;  %v1213_v32 = vpack.c.bf16 %v1186_v26, %v1185_v24  ;;  %v2884_v33 = vpop.f32.mrb[12].mxu0  ;;  %3053 = vmatpush3.bf16.msra.mxu0 %v3297_v6 }
 0x21d   : > { %v1261_v34 = vpack.c.bf16 %v1234_v30, %v1233_v28  ;;  %v875_v35 = vadd.f32 %v2884_v33, %v4133_v2  ;;  %v2932_v36 = vpop.f32.mrb[12].mxu1  ;;  %v866_v37 = vpop.f32.mrb[13].mxu0  ;;  %3101 = vmatpush3.bf16.msra.mxu1 %v3298_v11  ;;  %3054 = vmatprep.subr.bf16.mxu0 %v3299_v22 }
 0x21e   : > { %v1107_v39 = vadd.f32 %v2932_v36, %v4138_v3  ;;  %v867_v40 = vadd.f32 %v4133_v2, %v866_v37  ;;  %v1098_v41 = vpop.f32.mrb[13].mxu1  ;;  %v2885_v42 = vpop.f32.mrb[14].mxu0  ;;  %2974 = vmatprep.mubr.bf16.mxu0 %v1213_v32  ;;  %3102 = vmatprep.subr.bf16.mxu1 %v3300_v27 }
 0x21f   : > { %v1099_v44 = vadd.f32 %v4138_v3, %v1098_v41  ;;  %v878_v45 = vadd.f32 %v2885_v42, %v4133_v2  ;;  %v2933_v46 = vpop.f32.mrb[14].mxu1  ;;  %3022 = vmatprep.mubr.bf16.mxu1 %v1261_v34  ;;  %v869_v47 = vpop.f32.mrb[15].mxu0  ;;  %2975 = vmatmul.mubr.bf16.gmra.mrb[40].mxu0 %v1214_v29  ;;  %v1191_v51 = vmax.f32 %v875_v35, 0.0 }
 0x220   : > { %v1110_v48 = vadd.f32 %v2933_v46, %v4138_v3  ;;  %v870_v49 = vadd.f32 %v4133_v2, %v869_v47  ;;  %v1101_v50 = vpop.f32.mrb[15].mxu1  ;;  %3023 = vmatmul.mubr.bf16.gmra.mrb[40].mxu1 %v1262_v31  ;;  %3055 = vmatpush3.bf16.msra.mxu0 %v3299_v22  ;;  %v1239_v55 = vmax.f32 %v1107_v39, 0.0  ;;  %v1189_v56 = vmax.f32 %v867_v40, 0.0 }
 0x221   : > { %v1192_v52 = vmax.f32 %v878_v45, 0.0  ;;  %v1102_v53 = vadd.f32 %v4138_v3, %v1101_v50  ;;  %3103 = vmatpush3.bf16.msra.mxu1 %v3300_v27  ;;  %3056 = vmatprep.subr.bf16.mxu0 %v3301_v38  ;;  %v1237_v60 = vmax.f32 %v1099_v44, 0.0 }
 0x222   : > { %v1240_v57 = vmax.f32 %v1110_v48, 0.0  ;;  %v1190_v58 = vmax.f32 %v870_v49, 0.0  ;;  %3104 = vmatprep.subr.bf16.mxu1 %v3302_v43 }
 0x223   : > { %v1216_v61 = vpack.c.bf16 %v1192_v52, %v1191_v51  ;;  %v1238_v62 = vmax.f32 %v1102_v53, 0.0 }
 0x224   : > { %v1264_v63 = vpack.c.bf16 %v1240_v57, %v1239_v55  ;;  %v1215_v0 = vpack.c.bf16 %v1190_v58, %v1189_v56  ;;  %v2888_v4 = vpop.f32.mrb[16].mxu0  ;;  %3057 = vmatpush3.bf16.msra.mxu0 %v3301_v38 }
 0x225   : > { %v1263_v5 = vpack.c.bf16 %v1238_v62, %v1237_v60  ;;  %v891_v1 = vadd.f32 %v2888_v4, %v4133_v2  ;;  %v2936_v6 = vpop.f32.mrb[16].mxu1  ;;  %v882_v7 = vpop.f32.mrb[17].mxu0  ;;  %3105 = vmatpush3.bf16.msra.mxu1 %v3302_v43  ;;  %3058 = vmatprep.subr.bf16.mxu0 %v3303_v54 }
 0x226   : > { %v1123_v8 = vadd.f32 %v2936_v6, %v4138_v3  ;;  %v883_v9 = vadd.f32 %v4133_v2, %v882_v7  ;;  %v1114_v10 = vpop.f32.mrb[17].mxu1  ;;  %v2889_v11 = vpop.f32.mrb[18].mxu0  ;;  %2978 = vmatprep.mubr.bf16.mxu0 %v1215_v0  ;;  %3106 = vmatprep.subr.bf16.mxu1 %v3304_v59 }
 0x227   : > { %v1115_v12 = vadd.f32 %v4138_v3, %v1114_v10  ;;  %v894_v13 = vadd.f32 %v2889_v11, %v4133_v2  ;;  %v2937_v14 = vpop.f32.mrb[18].mxu1  ;;  %3026 = vmatprep.mubr.bf16.mxu1 %v1263_v5  ;;  %v885_v15 = vpop.f32.mrb[19].mxu0  ;;  %2979 = vmatmul.mubr.bf16.gmra.mrb[44].mxu0 %v1216_v61  ;;  %v1195_v19 = vmax.f32 %v891_v1, 0.0 }
 0x228   : > { %v1126_v16 = vadd.f32 %v2937_v14, %v4138_v3  ;;  %v886_v17 = vadd.f32 %v4133_v2, %v885_v15  ;;  %v1117_v18 = vpop.f32.mrb[19].mxu1  ;;  %3027 = vmatmul.mubr.bf16.gmra.mrb[44].mxu1 %v1264_v63  ;;  %3059 = vmatpush3.bf16.msra.mxu0 %v3303_v54  ;;  %v1243_v22 = vmax.f32 %v1123_v8, 0.0  ;;  %v1193_v23 = vmax.f32 %v883_v9, 0.0 }
 0x229   : > { %v1196_v20 = vmax.f32 %v894_v13, 0.0  ;;  %v1118_v21 = vadd.f32 %v4138_v3, %v1117_v18  ;;  %3107 = vmatpush3.bf16.msra.mxu1 %v3304_v59  ;;  %v1241_v26 = vmax.f32 %v1115_v12, 0.0 }
 0x22a   : > { %v1244_v24 = vmax.f32 %v1126_v16, 0.0  ;;  %v1194_v25 = vmax.f32 %v886_v17, 0.0 }
 0x22b   : > { %v1218_v27 = vpack.c.bf16 %v1196_v20, %v1195_v19  ;;  %v1242_v28 = vmax.f32 %v1118_v21, 0.0 }
 0x22c   : > { %v1266_v29 = vpack.c.bf16 %v1244_v24, %v1243_v22  ;;  %v1217_v30 = vpack.c.bf16 %v1194_v25, %v1193_v23  ;;  %v2892_v31 = vpop.f32.mrb[20].mxu0 }
 0x22d   : > { %v1265_v32 = vpack.c.bf16 %v1242_v28, %v1241_v26  ;;  %v907_v33 = vadd.f32 %v2892_v31, %v4133_v2  ;;  %v2940_v34 = vpop.f32.mrb[20].mxu1  ;;  %v898_v35 = vpop.f32.mrb[21].mxu0 }
 0x22e   : > { %v1139_v36 = vadd.f32 %v2940_v34, %v4138_v3  ;;  %v899_v37 = vadd.f32 %v4133_v2, %v898_v35  ;;  %v1130_v38 = vpop.f32.mrb[21].mxu1  ;;  %v2893_v39 = vpop.f32.mrb[22].mxu0  ;;  %2982 = vmatprep.mubr.bf16.mxu0 %v1217_v30 }
 0x22f   : > { %v1199_v40 = vmax.f32 %v907_v33, 0.0  ;;  %v1131_v41 = vadd.f32 %v4138_v3, %v1130_v38  ;;  %v910_v42 = vadd.f32 %v2893_v39, %v4133_v2  ;;  %v2941_v43 = vpop.f32.mrb[22].mxu1  ;;  %3030 = vmatprep.mubr.bf16.mxu1 %v1265_v32  ;;  %v901_v44 = vpop.f32.mrb[23].mxu0  ;;  %2983 = vmatmul.mubr.bf16.gmra.mrb[48].mxu0 %v1218_v27 }
 0x230   : > { %v1247_v45 = vmax.f32 %v1139_v36, 0.0  ;;  %v1197_v46 = vmax.f32 %v899_v37, 0.0  ;;  %v1142_v47 = vadd.f32 %v2941_v43, %v4138_v3  ;;  %v902_v48 = vadd.f32 %v4133_v2, %v901_v44  ;;  %v1133_v49 = vpop.f32.mrb[23].mxu1  ;;  %3031 = vmatmul.mubr.bf16.gmra.mrb[48].mxu1 %v1266_v29 }
 0x231   : > { %v1245_v50 = vmax.f32 %v1131_v41, 0.0  ;;  %v1200_v51 = vmax.f32 %v910_v42, 0.0  ;;  %v1134_v52 = vadd.f32 %v4138_v3, %v1133_v49 }
 0x232   : > { %v1248_v53 = vmax.f32 %v1142_v47, 0.0  ;;  %v1198_v54 = vmax.f32 %v902_v48, 0.0 }
 0x233   : > { %v1220_v55 = vpack.c.bf16 %v1200_v51, %v1199_v40  ;;  %v1246_v56 = vmax.f32 %v1134_v52, 0.0 }
 0x234   : > { %v1268_v57 = vpack.c.bf16 %v1248_v53, %v1247_v45  ;;  %v1219_v58 = vpack.c.bf16 %v1198_v54, %v1197_v46  ;;  %v2896_v59 = vpop.f32.mrb[24].mxu0  ;;  %v3305_v54 = vld [vmem:[#allocation13 + $0x38] sm:$0xff]  }
 0x235   : > { %v1267_v60 = vpack.c.bf16 %v1246_v56, %v1245_v50  ;;  %v923_v61 = vadd.f32 %v2896_v59, %v4133_v2  ;;  %v2944_v62 = vpop.f32.mrb[24].mxu1  ;;  %v914_v63 = vpop.f32.mrb[25].mxu0  ;;  %3060 = vmatprep.subr.bf16.mxu0 %v3305_v54 }
 0x236   : > { %2986 = vmatprep.mubr.bf16.mxu0 %v1219_v58  ;;  %v1155_v0 = vadd.f32 %v2944_v62, %v4138_v3  ;;  %v915_v4 = vadd.f32 %v4133_v2, %v914_v63  ;;  %v1146_v5 = vpop.f32.mrb[25].mxu1  ;;  %v2897_v1 = vpop.f32.mrb[26].mxu0  ;;  %3061 = vmatpush3.bf16.msra.mxu0 %v3305_v54 }
 0x237   : > { %3034 = vmatprep.mubr.bf16.mxu1 %v1267_v60  ;;  %2987 = vmatmul.mubr.bf16.gmra.mrb[52].mxu0 %v1220_v55  ;;  %v1203_v6 = vmax.f32 %v923_v61, 0.0  ;;  %v1147_v7 = vadd.f32 %v4138_v3, %v1146_v5  ;;  %v926_v8 = vadd.f32 %v2897_v1, %v4133_v2  ;;  %v2945_v9 = vpop.f32.mrb[26].mxu1  ;;  %v917_v10 = vpop.f32.mrb[27].mxu0  ;;  %v3306_v55 = vld [vmem:[#allocation14 + $0x38] sm:$0xff]  }
 0x238   : > { %3035 = vmatmul.mubr.bf16.gmra.mrb[52].mxu1 %v1268_v57  ;;  %v1251_v11 = vmax.f32 %v1155_v0, 0.0  ;;  %v1201_v12 = vmax.f32 %v915_v4, 0.0  ;;  %v1158_v13 = vadd.f32 %v2945_v9, %v4138_v3  ;;  %v918_v14 = vadd.f32 %v4133_v2, %v917_v10  ;;  %v1149_v15 = vpop.f32.mrb[27].mxu1  ;;  %3108 = vmatprep.subr.bf16.mxu1 %v3306_v55 }
 0x239   : > { %v1249_v16 = vmax.f32 %v1147_v7, 0.0  ;;  %v1204_v17 = vmax.f32 %v926_v8, 0.0  ;;  %v1150_v18 = vadd.f32 %v4138_v3, %v1149_v15  ;;  %3109 = vmatpush3.bf16.msra.mxu1 %v3306_v55 }
 0x23a   : > { %v1252_v19 = vmax.f32 %v1158_v13, 0.0  ;;  %v1202_v20 = vmax.f32 %v918_v14, 0.0 }
 0x23b   : > { %v1222_v21 = vpack.c.bf16 %v1204_v17, %v1203_v6  ;;  %v1250_v22 = vmax.f32 %v1150_v18, 0.0 }
 0x23c   : > { %v1270_v23 = vpack.c.bf16 %v1252_v19, %v1251_v11  ;;  %v1221_v24 = vpack.c.bf16 %v1202_v20, %v1201_v12  ;;  %v2900_v25 = vpop.f32.mrb[28].mxu0 }
 0x23d   : > { %v1269_v26 = vpack.c.bf16 %v1250_v22, %v1249_v16  ;;  %v939_v27 = vadd.f32 %v2900_v25, %v4133_v2  ;;  %v2948_v28 = vpop.f32.mrb[28].mxu1  ;;  %v930_v29 = vpop.f32.mrb[29].mxu0 }
 0x23e   : > { %2990 = vmatprep.mubr.bf16.mxu0 %v1221_v24  ;;  %v1171_v30 = vadd.f32 %v2948_v28, %v4138_v3  ;;  %v931_v31 = vadd.f32 %v4133_v2, %v930_v29  ;;  %v1162_v32 = vpop.f32.mrb[29].mxu1  ;;  %v2901_v33 = vpop.f32.mrb[30].mxu0 }
 0x23f   : > { %3038 = vmatprep.mubr.bf16.mxu1 %v1269_v26  ;;  %2991 = vmatmul.mubr.bf16.gmra.mrb[56].mxu0 %v1222_v21  ;;  %v1207_v34 = vmax.f32 %v939_v27, 0.0  ;;  %v1163_v35 = vadd.f32 %v4138_v3, %v1162_v32  ;;  %v942_v36 = vadd.f32 %v2901_v33, %v4133_v2  ;;  %v2949_v37 = vpop.f32.mrb[30].mxu1  ;;  %v933_v38 = vpop.f32.mrb[31].mxu0 }
 0x240   : > { %3039 = vmatmul.mubr.bf16.gmra.mrb[56].mxu1 %v1270_v23  ;;  %v1255_v39 = vmax.f32 %v1171_v30, 0.0  ;;  %v1205_v40 = vmax.f32 %v931_v31, 0.0  ;;  %v1174_v41 = vadd.f32 %v2949_v37, %v4138_v3  ;;  %v934_v42 = vadd.f32 %v4133_v2, %v933_v38  ;;  %v1165_v43 = vpop.f32.mrb[31].mxu1  ;;  %v4207_v2 = vld [vmem:[%s4475_s4] ss:$0 sm:$0xff]  ;;  %s4375_s4 = scalar_lea.hbm %s4479_s13, %s2709_s23 }
 0x241   : > { %v1253_v44 = vmax.f32 %v1163_v35, 0.0  ;;  %v1208_v45 = vmax.f32 %v942_v36, 0.0  ;;  %v1166_v46 = vadd.f32 %v4138_v3, %v1165_v43  ;;  %v4212_v3 = vld [vmem:[%s4476_s24] ss:$0 sm:$0xff]  ;;  %s3539_s24 = sshll.u32 %s3636_s19, 4  ;;  %s3540_s24 = int_to_ptr.vmem [resolvable:$false] %s3539_s24 }
 0x242   : > { %v1256_v47 = vmax.f32 %v1174_v41, 0.0  ;;  %v1206_v48 = vmax.f32 %v934_v42, 0.0  ;;  %s3541_s27 = scalar_lea.vmem %s3540_s24, 64  ;;  %p3542_p9 = scmp.lt.s32.totalorder %s4377_s11, %s3540_s24 }
 0x243   : > { %v1224_v49 = vpack.c.bf16 %v1208_v45, %v1207_v34  ;;  %v1254_v50 = vmax.f32 %v1166_v46, 0.0  ;;  %p3543_p8 = scmp.lt.s32.totalorder %s3541_s27, %s3535_s14 }
 0x244   : > { %v1272_v51 = vpack.c.bf16 %v1256_v47, %v1255_v39  ;;  %v1223_v52 = vpack.c.bf16 %v1206_v48, %v1205_v40 }
 0x245   : > { %v1271_v53 = vpack.c.bf16 %v1254_v50, %v1253_v44  ;;  %p3544_p11 = por %p3543_p8, %p3542_p9 }
 0x246   : > { %2994 = vmatprep.mubr.bf16.mxu0 %v1223_v52 }
 0x247   : > { %3042 = vmatprep.mubr.bf16.mxu1 %v1271_v53  ;;  %2995 = vmatmul.mubr.bf16.gmra.mrb[60].mxu0 %v1224_v49  ;;  %p3545_p3 = pnand %p3544_p11, %p3538_p7 }
 0x248   : > { %3043 = vmatmul.mubr.bf16.gmra.mrb[60].mxu1 %v1272_v51 }
 0x2e2   : > { %v2968_v56 = vpop.f32.mrb[32].mxu0 }
 0x2e3   : > { %v1387_v57 = vadd.f32 %v2968_v56, %v4207_v2  ;;  %v3016_v58 = vpop.f32.mrb[32].mxu1  ;;  %v1378_v59 = vpop.f32.mrb[33].mxu0 }
 0x2e4   : > { %v1619_v60 = vadd.f32 %v3016_v58, %v4212_v3  ;;  %v1379_v61 = vadd.f32 %v4207_v2, %v1378_v59  ;;  %v1610_v62 = vpop.f32.mrb[33].mxu1  ;;  %v2969_v63 = vpop.f32.mrb[34].mxu0 }
 0x2e5   : > { %v1611_v0 = vadd.f32 %v4212_v3, %v1610_v62  ;;  %v1390_v4 = vadd.f32 %v2969_v63, %v4207_v2  ;;  %v3017_v5 = vpop.f32.mrb[34].mxu1  ;;  %v1381_v1 = vpop.f32.mrb[35].mxu0  ;;  %v1739_v9 = vmax.f32 %v1387_v57, 0.0 }
 0x2e6   : > { %v1622_v6 = vadd.f32 %v3017_v5, %v4212_v3  ;;  %v1382_v7 = vadd.f32 %v4207_v2, %v1381_v1  ;;  %v1613_v8 = vpop.f32.mrb[35].mxu1  ;;  %v1787_v12 = vmax.f32 %v1619_v60, 0.0  ;;  %v1737_v13 = vmax.f32 %v1379_v61, 0.0 }
 0x2e7   : > { %v1740_v10 = vmax.f32 %v1390_v4, 0.0  ;;  %v1614_v11 = vadd.f32 %v4212_v3, %v1613_v8  ;;  %v1785_v16 = vmax.f32 %v1611_v0, 0.0 }
 0x2e8   : > { %v1788_v14 = vmax.f32 %v1622_v6, 0.0  ;;  %v1738_v15 = vmax.f32 %v1382_v7, 0.0 }
 0x2e9   : > { %v1770_v17 = vpack.c.bf16 %v1740_v10, %v1739_v9  ;;  %v1786_v18 = vmax.f32 %v1614_v11, 0.0 }
 0x2ea   : > { %v1818_v19 = vpack.c.bf16 %v1788_v14, %v1787_v12  ;;  %v1769_v20 = vpack.c.bf16 %v1738_v15, %v1737_v13  ;;  %v2972_v21 = vpop.f32.mrb[36].mxu0 }
 0x2eb   : > { %v1817_v22 = vpack.c.bf16 %v1786_v18, %v1785_v16  ;;  %v1403_v23 = vadd.f32 %v2972_v21, %v4207_v2  ;;  %v3020_v24 = vpop.f32.mrb[36].mxu1  ;;  %v1394_v25 = vpop.f32.mrb[37].mxu0 }
 0x2ec   : > { %v1635_v26 = vadd.f32 %v3020_v24, %v4212_v3  ;;  %v1395_v27 = vadd.f32 %v4207_v2, %v1394_v25  ;;  %v1626_v28 = vpop.f32.mrb[37].mxu1  ;;  %v2973_v29 = vpop.f32.mrb[38].mxu0  ;;  %3062 = vmatprep.mubr.bf16.mxu0 %v1769_v20 }
 0x2ed   : > { %v1627_v30 = vadd.f32 %v4212_v3, %v1626_v28  ;;  %v1406_v31 = vadd.f32 %v2973_v29, %v4207_v2  ;;  %v3021_v32 = vpop.f32.mrb[38].mxu1  ;;  %3110 = vmatprep.mubr.bf16.mxu1 %v1817_v22  ;;  %v1397_v33 = vpop.f32.mrb[39].mxu0  ;;  %3063 = vmatmul.mubr.bf16.vlgmr.msra.gmra.mrb[64].mxu0 %v1770_v17  ;;  %v1743_v37 = vmax.f32 %v1403_v23, 0.0 }
 0x2ee   : > { %v1638_v34 = vadd.f32 %v3021_v32, %v4212_v3  ;;  %v1398_v35 = vadd.f32 %v4207_v2, %v1397_v33  ;;  %v1629_v36 = vpop.f32.mrb[39].mxu1  ;;  %3111 = vmatmul.mubr.bf16.vlgmr.msra.gmra.mrb[64].mxu1 %v1818_v19  ;;  %v1791_v40 = vmax.f32 %v1635_v26, 0.0  ;;  %v1741_v41 = vmax.f32 %v1395_v27, 0.0 }
 0x2ef   : > { %v1744_v38 = vmax.f32 %v1406_v31, 0.0  ;;  %v1630_v39 = vadd.f32 %v4212_v3, %v1629_v36  ;;  %v1789_v44 = vmax.f32 %v1627_v30, 0.0 }
 0x2f0   : > { %v1792_v42 = vmax.f32 %v1638_v34, 0.0  ;;  %v1742_v43 = vmax.f32 %v1398_v35, 0.0 }
 0x2f1   : > { %v1772_v45 = vpack.c.bf16 %v1744_v38, %v1743_v37  ;;  %v1790_v46 = vmax.f32 %v1630_v39, 0.0 }
 0x2f2   : > { %v1820_v47 = vpack.c.bf16 %v1792_v42, %v1791_v40  ;;  %v1771_v48 = vpack.c.bf16 %v1742_v43, %v1741_v41  ;;  %v2976_v49 = vpop.f32.mrb[40].mxu0 }
 0x2f3   : > { %v1819_v50 = vpack.c.bf16 %v1790_v46, %v1789_v44  ;;  %v1419_v51 = vadd.f32 %v2976_v49, %v4207_v2  ;;  %v3024_v52 = vpop.f32.mrb[40].mxu1  ;;  %v1410_v53 = vpop.f32.mrb[41].mxu0 }
 0x2f4   : > { %v1651_v54 = vadd.f32 %v3024_v52, %v4212_v3  ;;  %v1411_v55 = vadd.f32 %v4207_v2, %v1410_v53  ;;  %v1642_v56 = vpop.f32.mrb[41].mxu1  ;;  %v2977_v57 = vpop.f32.mrb[42].mxu0  ;;  %3066 = vmatprep.mubr.bf16.mxu0 %v1771_v48 }
 0x2f5   : > { %v1643_v58 = vadd.f32 %v4212_v3, %v1642_v56  ;;  %v1422_v59 = vadd.f32 %v2977_v57, %v4207_v2  ;;  %v3025_v60 = vpop.f32.mrb[42].mxu1  ;;  %3114 = vmatprep.mubr.bf16.mxu1 %v1819_v50  ;;  %v1413_v61 = vpop.f32.mrb[43].mxu0  ;;  %3067 = vmatmul.mubr.bf16.gmra.mrb[68].mxu0 %v1772_v45  ;;  %v1747_v4 = vmax.f32 %v1419_v51, 0.0 }
 0x2f6   : > { %v1654_v62 = vadd.f32 %v3025_v60, %v4212_v3  ;;  %v1414_v63 = vadd.f32 %v4207_v2, %v1413_v61  ;;  %v1645_v0 = vpop.f32.mrb[43].mxu1  ;;  %3115 = vmatmul.mubr.bf16.gmra.mrb[68].mxu1 %v1820_v47  ;;  %v1795_v6 = vmax.f32 %v1651_v54, 0.0  ;;  %v1745_v7 = vmax.f32 %v1411_v55, 0.0 }
 0x2f7   : > { %v1748_v5 = vmax.f32 %v1422_v59, 0.0  ;;  %v1646_v1 = vadd.f32 %v4212_v3, %v1645_v0  ;;  %v1793_v10 = vmax.f32 %v1643_v58, 0.0 }
 0x2f8   : > { %v1796_v8 = vmax.f32 %v1654_v62, 0.0  ;;  %v1746_v9 = vmax.f32 %v1414_v63, 0.0 }
 0x2f9   : > { %v1774_v11 = vpack.c.bf16 %v1748_v5, %v1747_v4  ;;  %v1794_v12 = vmax.f32 %v1646_v1, 0.0 }
 0x2fa   : > { %v1822_v13 = vpack.c.bf16 %v1796_v8, %v1795_v6  ;;  %v1773_v14 = vpack.c.bf16 %v1746_v9, %v1745_v7  ;;  %v2980_v15 = vpop.f32.mrb[44].mxu0 }
 0x2fb   : > { %v1821_v16 = vpack.c.bf16 %v1794_v12, %v1793_v10  ;;  %v1435_v17 = vadd.f32 %v2980_v15, %v4207_v2  ;;  %v3028_v18 = vpop.f32.mrb[44].mxu1  ;;  %v1426_v19 = vpop.f32.mrb[45].mxu0 }
 0x2fc   : > { %v1667_v20 = vadd.f32 %v3028_v18, %v4212_v3  ;;  %v1427_v21 = vadd.f32 %v4207_v2, %v1426_v19  ;;  %v1658_v22 = vpop.f32.mrb[45].mxu1  ;;  %v2981_v23 = vpop.f32.mrb[46].mxu0  ;;  %3070 = vmatprep.mubr.bf16.mxu0 %v1773_v14 }
 0x2fd   : > { %v1659_v24 = vadd.f32 %v4212_v3, %v1658_v22  ;;  %v1438_v25 = vadd.f32 %v2981_v23, %v4207_v2  ;;  %v3029_v26 = vpop.f32.mrb[46].mxu1  ;;  %3118 = vmatprep.mubr.bf16.mxu1 %v1821_v16  ;;  %v1429_v27 = vpop.f32.mrb[47].mxu0  ;;  %3071 = vmatmul.mubr.bf16.gmra.mrb[72].mxu0 %v1774_v11  ;;  %v1751_v31 = vmax.f32 %v1435_v17, 0.0 }
 0x2fe   : > { %v1670_v28 = vadd.f32 %v3029_v26, %v4212_v3  ;;  %v1430_v29 = vadd.f32 %v4207_v2, %v1429_v27  ;;  %v1661_v30 = vpop.f32.mrb[47].mxu1  ;;  %3119 = vmatmul.mubr.bf16.gmra.mrb[72].mxu1 %v1822_v13  ;;  %v1799_v34 = vmax.f32 %v1667_v20, 0.0  ;;  %v1749_v35 = vmax.f32 %v1427_v21, 0.0 }
 0x2ff   : > { %v1752_v32 = vmax.f32 %v1438_v25, 0.0  ;;  %v1662_v33 = vadd.f32 %v4212_v3, %v1661_v30  ;;  %v1797_v38 = vmax.f32 %v1659_v24, 0.0 }
 0x300   : > { %v1800_v36 = vmax.f32 %v1670_v28, 0.0  ;;  %v1750_v37 = vmax.f32 %v1430_v29, 0.0 }
 0x301   : > { %v1776_v39 = vpack.c.bf16 %v1752_v32, %v1751_v31  ;;  %v1798_v40 = vmax.f32 %v1662_v33, 0.0 }
 0x302   : > { %v1824_v41 = vpack.c.bf16 %v1800_v36, %v1799_v34  ;;  %v1775_v42 = vpack.c.bf16 %v1750_v37, %v1749_v35  ;;  %v2984_v43 = vpop.f32.mrb[48].mxu0 }
 0x303   : > { %v1823_v44 = vpack.c.bf16 %v1798_v40, %v1797_v38  ;;  %v1451_v45 = vadd.f32 %v2984_v43, %v4207_v2  ;;  %v3032_v46 = vpop.f32.mrb[48].mxu1  ;;  %v1442_v47 = vpop.f32.mrb[49].mxu0 }
 0x304   : > { %v1683_v48 = vadd.f32 %v3032_v46, %v4212_v3  ;;  %v1443_v49 = vadd.f32 %v4207_v2, %v1442_v47  ;;  %v1674_v50 = vpop.f32.mrb[49].mxu1  ;;  %v2985_v51 = vpop.f32.mrb[50].mxu0  ;;  %3074 = vmatprep.mubr.bf16.mxu0 %v1775_v42 }
 0x305   : > { %v1675_v52 = vadd.f32 %v4212_v3, %v1674_v50  ;;  %v1454_v53 = vadd.f32 %v2985_v51, %v4207_v2  ;;  %v3033_v54 = vpop.f32.mrb[50].mxu1  ;;  %3122 = vmatprep.mubr.bf16.mxu1 %v1823_v44  ;;  %v1445_v55 = vpop.f32.mrb[51].mxu0  ;;  %3075 = vmatmul.mubr.bf16.gmra.mrb[76].mxu0 %v1776_v39  ;;  %v1755_v59 = vmax.f32 %v1451_v45, 0.0 }
 0x306   : > { %v1686_v56 = vadd.f32 %v3033_v54, %v4212_v3  ;;  %v1446_v57 = vadd.f32 %v4207_v2, %v1445_v55  ;;  %v1677_v58 = vpop.f32.mrb[51].mxu1  ;;  %3123 = vmatmul.mubr.bf16.gmra.mrb[76].mxu1 %v1824_v41  ;;  %v1803_v62 = vmax.f32 %v1683_v48, 0.0  ;;  %v1753_v63 = vmax.f32 %v1443_v49, 0.0 }
 0x307   : > { %v1756_v60 = vmax.f32 %v1454_v53, 0.0  ;;  %v1678_v61 = vadd.f32 %v4212_v3, %v1677_v58  ;;  %v1801_v5 = vmax.f32 %v1675_v52, 0.0 }
 0x308   : > { %v1804_v0 = vmax.f32 %v1686_v56, 0.0  ;;  %v1754_v4 = vmax.f32 %v1446_v57, 0.0 }
 0x309   : > { %v1778_v1 = vpack.c.bf16 %v1756_v60, %v1755_v59  ;;  %v1802_v6 = vmax.f32 %v1678_v61, 0.0 }
 0x30a   : > { %v1826_v7 = vpack.c.bf16 %v1804_v0, %v1803_v62  ;;  %v1777_v8 = vpack.c.bf16 %v1754_v4, %v1753_v63  ;;  %v2988_v9 = vpop.f32.mrb[52].mxu0 }
 0x30b   : > { %v1825_v10 = vpack.c.bf16 %v1802_v6, %v1801_v5  ;;  %v1467_v11 = vadd.f32 %v2988_v9, %v4207_v2  ;;  %v3036_v12 = vpop.f32.mrb[52].mxu1  ;;  %v1458_v13 = vpop.f32.mrb[53].mxu0 }
 0x30c   : > { %v1699_v14 = vadd.f32 %v3036_v12, %v4212_v3  ;;  %v1459_v15 = vadd.f32 %v4207_v2, %v1458_v13  ;;  %v1690_v16 = vpop.f32.mrb[53].mxu1  ;;  %v2989_v17 = vpop.f32.mrb[54].mxu0  ;;  %3078 = vmatprep.mubr.bf16.mxu0 %v1777_v8 }
 0x30d   : > { %v1759_v18 = vmax.f32 %v1467_v11, 0.0  ;;  %v1691_v19 = vadd.f32 %v4212_v3, %v1690_v16  ;;  %v1470_v20 = vadd.f32 %v2989_v17, %v4207_v2  ;;  %v3037_v21 = vpop.f32.mrb[54].mxu1  ;;  %3126 = vmatprep.mubr.bf16.mxu1 %v1825_v10  ;;  %v1461_v22 = vpop.f32.mrb[55].mxu0  ;;  %3079 = vmatmul.mubr.bf16.gmra.mrb[80].mxu0 %v1778_v1 }
 0x30e   : > { %v1807_v23 = vmax.f32 %v1699_v14, 0.0  ;;  %v1757_v24 = vmax.f32 %v1459_v15, 0.0  ;;  %v1702_v25 = vadd.f32 %v3037_v21, %v4212_v3  ;;  %v1462_v26 = vadd.f32 %v4207_v2, %v1461_v22  ;;  %v1693_v27 = vpop.f32.mrb[55].mxu1  ;;  %3127 = vmatmul.mubr.bf16.gmra.mrb[80].mxu1 %v1826_v7 }
 0x30f   : > { %v1805_v28 = vmax.f32 %v1691_v19, 0.0  ;;  %v1760_v29 = vmax.f32 %v1470_v20, 0.0  ;;  %v1694_v30 = vadd.f32 %v4212_v3, %v1693_v27 }
 0x310   : > { %v1808_v31 = vmax.f32 %v1702_v25, 0.0  ;;  %v1758_v32 = vmax.f32 %v1462_v26, 0.0 }
 0x311   : > { %v1780_v33 = vpack.c.bf16 %v1760_v29, %v1759_v18  ;;  %v1806_v34 = vmax.f32 %v1694_v30, 0.0 }
 0x312   : > { %v1828_v35 = vpack.c.bf16 %v1808_v31, %v1807_v23  ;;  %v1779_v36 = vpack.c.bf16 %v1758_v32, %v1757_v24  ;;  %v2992_v37 = vpop.f32.mrb[56].mxu0 }
 0x313   : > { %v1827_v38 = vpack.c.bf16 %v1806_v34, %v1805_v28  ;;  %v1483_v39 = vadd.f32 %v2992_v37, %v4207_v2  ;;  %v3040_v40 = vpop.f32.mrb[56].mxu1  ;;  %v1474_v41 = vpop.f32.mrb[57].mxu0 }
 0x314   : > { %3082 = vmatprep.mubr.bf16.mxu0 %v1779_v36  ;;  %v1715_v42 = vadd.f32 %v3040_v40, %v4212_v3  ;;  %v1475_v43 = vadd.f32 %v4207_v2, %v1474_v41  ;;  %v1706_v44 = vpop.f32.mrb[57].mxu1  ;;  %v2993_v45 = vpop.f32.mrb[58].mxu0 }
 0x315   : > { %3130 = vmatprep.mubr.bf16.mxu1 %v1827_v38  ;;  %3083 = vmatmul.mubr.bf16.gmra.mrb[84].mxu0 %v1780_v33  ;;  %v1763_v46 = vmax.f32 %v1483_v39, 0.0  ;;  %v1707_v47 = vadd.f32 %v4212_v3, %v1706_v44  ;;  %v1486_v48 = vadd.f32 %v2993_v45, %v4207_v2  ;;  %v3041_v49 = vpop.f32.mrb[58].mxu1  ;;  %v1477_v50 = vpop.f32.mrb[59].mxu0 }
 0x316   : > { %3131 = vmatmul.mubr.bf16.gmra.mrb[84].mxu1 %v1828_v35  ;;  %v1811_v51 = vmax.f32 %v1715_v42, 0.0  ;;  %v1761_v52 = vmax.f32 %v1475_v43, 0.0  ;;  %v1718_v53 = vadd.f32 %v3041_v49, %v4212_v3  ;;  %v1478_v54 = vadd.f32 %v4207_v2, %v1477_v50  ;;  %v1709_v55 = vpop.f32.mrb[59].mxu1 }
 0x317   : > { %v1809_v56 = vmax.f32 %v1707_v47, 0.0  ;;  %v1764_v57 = vmax.f32 %v1486_v48, 0.0  ;;  %v1710_v58 = vadd.f32 %v4212_v3, %v1709_v55 }
 0x318   : > { %v1812_v59 = vmax.f32 %v1718_v53, 0.0  ;;  %v1762_v60 = vmax.f32 %v1478_v54, 0.0 }
 0x319   : > { %v1782_v61 = vpack.c.bf16 %v1764_v57, %v1763_v46  ;;  %v1810_v62 = vmax.f32 %v1710_v58, 0.0 }
 0x31a   : > { %v1830_v63 = vpack.c.bf16 %v1812_v59, %v1811_v51  ;;  %v1781_v0 = vpack.c.bf16 %v1762_v60, %v1761_v52  ;;  %v2996_v4 = vpop.f32.mrb[60].mxu0 }
 0x31b   : > { %v1829_v5 = vpack.c.bf16 %v1810_v62, %v1809_v56  ;;  %v1499_v1 = vadd.f32 %v2996_v4, %v4207_v2  ;;  %v3044_v6 = vpop.f32.mrb[60].mxu1  ;;  %v1490_v7 = vpop.f32.mrb[61].mxu0 }
 0x31c   : > { %3086 = vmatprep.mubr.bf16.mxu0 %v1781_v0  ;;  %v1731_v8 = vadd.f32 %v3044_v6, %v4212_v3  ;;  %v1491_v9 = vadd.f32 %v4207_v2, %v1490_v7  ;;  %v1722_v10 = vpop.f32.mrb[61].mxu1  ;;  %v2997_v11 = vpop.f32.mrb[62].mxu0 }
 0x31d   : > { %3134 = vmatprep.mubr.bf16.mxu1 %v1829_v5  ;;  %3087 = vmatmul.mubr.bf16.gmra.mrb[88].mxu0 %v1782_v61  ;;  %v1767_v12 = vmax.f32 %v1499_v1, 0.0  ;;  %v1723_v13 = vadd.f32 %v4212_v3, %v1722_v10  ;;  %v1502_v14 = vadd.f32 %v2997_v11, %v4207_v2  ;;  %v3045_v15 = vpop.f32.mrb[62].mxu1  ;;  %v1493_v16 = vpop.f32.mrb[63].mxu0 }
 0x31e   : > { %3135 = vmatmul.mubr.bf16.gmra.mrb[88].mxu1 %v1830_v63  ;;  %v1815_v17 = vmax.f32 %v1731_v8, 0.0  ;;  %v1765_v18 = vmax.f32 %v1491_v9, 0.0  ;;  %v1734_v19 = vadd.f32 %v3045_v15, %v4212_v3  ;;  %v1494_v20 = vadd.f32 %v4207_v2, %v1493_v16  ;;  %v1725_v21 = vpop.f32.mrb[63].mxu1  ;;  %v4281_v2 = vld [vmem:[%s4477_s25] ss:$0 sm:$0xff] }
 0x31f   : > { %v1813_v22 = vmax.f32 %v1723_v13, 0.0  ;;  %v1768_v23 = vmax.f32 %v1502_v14, 0.0  ;;  %v1726_v24 = vadd.f32 %v4212_v3, %v1725_v21  ;;  %v4286_v3 = vld [vmem:[%s4478_s20] ss:$0 sm:$0xff] }
 0x320   : > { %v1816_v25 = vmax.f32 %v1734_v19, 0.0  ;;  %v1766_v26 = vmax.f32 %v1494_v20, 0.0 }
 0x321   : > { %v1784_v27 = vpack.c.bf16 %v1768_v23, %v1767_v12  ;;  %v1814_v28 = vmax.f32 %v1726_v24, 0.0 }
 0x322   : > { %v1832_v29 = vpack.c.bf16 %v1816_v25, %v1815_v17  ;;  %v1783_v30 = vpack.c.bf16 %v1766_v26, %v1765_v18 }
 0x323   : > { %v1831_v31 = vpack.c.bf16 %v1814_v28, %v1813_v22 }
 0x324   : > { %3090 = vmatprep.mubr.bf16.mxu0 %v1783_v30 }
 0x325   : > { %3138 = vmatprep.mubr.bf16.mxu1 %v1831_v31  ;;  %3091 = vmatmul.mubr.bf16.gmra.mrb[92].mxu0 %v1784_v27 }
 0x326   : > { %3139 = vmatmul.mubr.bf16.gmra.mrb[92].mxu1 %v1832_v29 }
 0x3c0   : > { %v3064_v32 = vpop.f32.mrb[64].mxu0 }
 0x3c1   : > { %v1947_v33 = vadd.f32 %v3064_v32, %v4281_v2  ;;  %v3112_v34 = vpop.f32.mrb[64].mxu1  ;;  %v1938_v35 = vpop.f32.mrb[65].mxu0 }
 0x3c2   : > { %v2179_v36 = vadd.f32 %v3112_v34, %v4286_v3  ;;  %v1939_v37 = vadd.f32 %v4281_v2, %v1938_v35  ;;  %v2170_v38 = vpop.f32.mrb[65].mxu1  ;;  %v3065_v39 = vpop.f32.mrb[66].mxu0 }
 0x3c3   : > { %v2171_v40 = vadd.f32 %v4286_v3, %v2170_v38  ;;  %v1950_v41 = vadd.f32 %v3065_v39, %v4281_v2  ;;  %v3113_v42 = vpop.f32.mrb[66].mxu1  ;;  %v1941_v43 = vpop.f32.mrb[67].mxu0 }
 0x3c4   : > { %v2182_v44 = vadd.f32 %v3113_v42, %v4286_v3  ;;  %v1942_v45 = vadd.f32 %v4281_v2, %v1941_v43  ;;  %v2173_v46 = vpop.f32.mrb[67].mxu1  ;;  %v2299_v47 = vmul.f32 %v2179_v36, %v1947_v33 }
 0x3c5   : > { %v2174_v48 = vadd.f32 %v4286_v3, %v2173_v46  ;;  %v2297_v49 = vmul.f32 %v2171_v40, %v1939_v37 }
 0x3c6   : > { %v2300_v50 = vmul.f32 %v2182_v44, %v1950_v41 }
 0x3c7   : > { %2329 = vxpose.xlu0.b32.start [1/16] %v2297_v49, 128  ;;  %v2298_v51 = vmul.f32 %v2174_v48, %v1942_v45 }
 0x3c8   : > { %v3068_v52 = vpop.f32.mrb[68].mxu0 }
 0x3c9   : > { %v1963_v53 = vadd.f32 %v3068_v52, %v4281_v2  ;;  %v3116_v54 = vpop.f32.mrb[68].mxu1  ;;  %v1954_v55 = vpop.f32.mrb[69].mxu0 }
 0x3ca   : > { %v2195_v56 = vadd.f32 %v3116_v54, %v4286_v3  ;;  %v1955_v57 = vadd.f32 %v4281_v2, %v1954_v55  ;;  %v2186_v58 = vpop.f32.mrb[69].mxu1  ;;  %v3069_v59 = vpop.f32.mrb[70].mxu0 }
 0x3cb   : > { %v2187_v60 = vadd.f32 %v4286_v3, %v2186_v58  ;;  %v1966_v61 = vadd.f32 %v3069_v59, %v4281_v2  ;;  %v3117_v62 = vpop.f32.mrb[70].mxu1  ;;  %2330 = vxpose.xlu0.b32.cont [2/16] %v2298_v51, 128  ;;  %v1957_v63 = vpop.f32.mrb[71].mxu0 }
 0x3cc   : > { %v2198_v0 = vadd.f32 %v3117_v62, %v4286_v3  ;;  %v1958_v4 = vadd.f32 %v4281_v2, %v1957_v63  ;;  %v2189_v5 = vpop.f32.mrb[71].mxu1  ;;  %v2303_v1 = vmul.f32 %v2195_v56, %v1963_v53 }
 0x3cd   : > { %v2190_v6 = vadd.f32 %v4286_v3, %v2189_v5  ;;  %v2301_v7 = vmul.f32 %v2187_v60, %v1955_v57 }
 0x3ce   : > { %v2304_v8 = vmul.f32 %v2198_v0, %v1966_v61 }
 0x3cf   : > { %2331 = vxpose.xlu0.b32.cont [3/16] %v2299_v47, 128  ;;  %v2302_v9 = vmul.f32 %v2190_v6, %v1958_v4 }
 0x3d0   : > { %v3072_v10 = vpop.f32.mrb[72].mxu0 }
 0x3d1   : > { %v1979_v11 = vadd.f32 %v3072_v10, %v4281_v2  ;;  %v3120_v12 = vpop.f32.mrb[72].mxu1  ;;  %v1970_v13 = vpop.f32.mrb[73].mxu0 }
 0x3d2   : > { %v2211_v14 = vadd.f32 %v3120_v12, %v4286_v3  ;;  %v1971_v15 = vadd.f32 %v4281_v2, %v1970_v13  ;;  %v2202_v16 = vpop.f32.mrb[73].mxu1  ;;  %v3073_v17 = vpop.f32.mrb[74].mxu0 }
 0x3d3   : > { %v2203_v18 = vadd.f32 %v4286_v3, %v2202_v16  ;;  %v1982_v19 = vadd.f32 %v3073_v17, %v4281_v2  ;;  %v3121_v20 = vpop.f32.mrb[74].mxu1  ;;  %2332 = vxpose.xlu0.b32.cont [4/16] %v2300_v50, 128  ;;  %v1973_v21 = vpop.f32.mrb[75].mxu0 }
 0x3d4   : > { %v2214_v22 = vadd.f32 %v3121_v20, %v4286_v3  ;;  %v1974_v23 = vadd.f32 %v4281_v2, %v1973_v21  ;;  %v2205_v24 = vpop.f32.mrb[75].mxu1  ;;  %v4311_v25 = vmul.f32 %v2211_v14, %v1979_v11 }
 0x3d5   : > { %v2206_v26 = vadd.f32 %v4286_v3, %v2205_v24  ;;  %v2305_v27 = vmul.f32 %v2203_v18, %v1971_v15 }
 0x3d6   : > { %v4314_v28 = vmul.f32 %v2214_v22, %v1982_v19 }
 0x3d7   : > { %2333 = vxpose.xlu0.b32.cont [5/16] %v2301_v7, 128  ;;  %v2306_v29 = vmul.f32 %v2206_v26, %v1974_v23 }
 0x3d8   : > { %v3076_v30 = vpop.f32.mrb[76].mxu0 }
 0x3d9   : > { %v1995_v31 = vadd.f32 %v3076_v30, %v4281_v2  ;;  %v3124_v32 = vpop.f32.mrb[76].mxu1  ;;  %v1986_v33 = vpop.f32.mrb[77].mxu0 }
 0x3da   : > { %v2227_v34 = vadd.f32 %v3124_v32, %v4286_v3  ;;  %v1987_v35 = vadd.f32 %v4281_v2, %v1986_v33  ;;  %v2218_v36 = vpop.f32.mrb[77].mxu1  ;;  %v3077_v37 = vpop.f32.mrb[78].mxu0 }
 0x3db   : > { %v2219_v38 = vadd.f32 %v4286_v3, %v2218_v36  ;;  %v1998_v39 = vadd.f32 %v3077_v37, %v4281_v2  ;;  %v3125_v40 = vpop.f32.mrb[78].mxu1  ;;  %2334 = vxpose.xlu0.b32.cont [6/16] %v2302_v9, 128  ;;  %v1989_v41 = vpop.f32.mrb[79].mxu0 }
 0x3dc   : > { %v2230_v42 = vadd.f32 %v3125_v40, %v4286_v3  ;;  %v1990_v43 = vadd.f32 %v4281_v2, %v1989_v41  ;;  %v2221_v44 = vpop.f32.mrb[79].mxu1  ;;  %v4323_v45 = vmul.f32 %v2227_v34, %v1995_v31 }
 0x3dd   : > { %v2222_v46 = vadd.f32 %v4286_v3, %v2221_v44  ;;  %v4326_v47 = vmul.f32 %v2219_v38, %v1987_v35 }
 0x3de   : > { %v4328_v48 = vmul.f32 %v2230_v42, %v1998_v39 }
 0x3df   : > { %2335 = vxpose.xlu0.b32.cont [7/16] %v2303_v1, 128  ;;  %v4330_v49 = vmul.f32 %v2222_v46, %v1990_v43 }
 0x3e0   : > { %v3080_v50 = vpop.f32.mrb[80].mxu0 }
 0x3e1   : > { %v2011_v51 = vadd.f32 %v3080_v50, %v4281_v2  ;;  %v3128_v52 = vpop.f32.mrb[80].mxu1  ;;  %v2002_v53 = vpop.f32.mrb[81].mxu0 }
 0x3e2   : > { %v2243_v54 = vadd.f32 %v3128_v52, %v4286_v3  ;;  %v2003_v55 = vadd.f32 %v4281_v2, %v2002_v53  ;;  %v2234_v56 = vpop.f32.mrb[81].mxu1  ;;  %v3081_v57 = vpop.f32.mrb[82].mxu0 }
 0x3e3   : > { %v2235_v58 = vadd.f32 %v4286_v3, %v2234_v56  ;;  %v2014_v59 = vadd.f32 %v3081_v57, %v4281_v2  ;;  %v3129_v60 = vpop.f32.mrb[82].mxu1  ;;  %2336 = vxpose.xlu0.b32.cont [8/16] %v2304_v8, 128  ;;  %v2005_v61 = vpop.f32.mrb[83].mxu0 }
 0x3e4   : > { %v2246_v62 = vadd.f32 %v3129_v60, %v4286_v3  ;;  %v2006_v63 = vadd.f32 %v4281_v2, %v2005_v61  ;;  %v2237_v0 = vpop.f32.mrb[83].mxu1  ;;  %v2315_v4 = vmul.f32 %v2243_v54, %v2011_v51 }
 0x3e5   : > { %v2238_v5 = vadd.f32 %v4286_v3, %v2237_v0  ;;  %v2313_v1 = vmul.f32 %v2235_v58, %v2003_v55 }
 0x3e6   : > { %v2316_v6 = vmul.f32 %v2246_v62, %v2014_v59 }
 0x3e7   : > { %2361 = vxpose.xlu1.b32.start [1/16] %v2313_v1, 128  ;;  %2337 = vxpose.xlu0.b32.cont [9/16] %v2305_v27, 128  ;;  %v2314_v7 = vmul.f32 %v2238_v5, %v2006_v63 }
 0x3e8   : > { %v3084_v9 = vpop.f32.mrb[84].mxu0 }
 0x3e9   : > { %v2027_v10 = vadd.f32 %v3084_v9, %v4281_v2  ;;  %v3132_v11 = vpop.f32.mrb[84].mxu1  ;;  %v2018_v12 = vpop.f32.mrb[85].mxu0 }
 0x3ea   : > { %v2259_v8 = vadd.f32 %v3132_v11, %v4286_v3  ;;  %v2019_v13 = vadd.f32 %v4281_v2, %v2018_v12  ;;  %v2250_v14 = vpop.f32.mrb[85].mxu1  ;;  %v3085_v15 = vpop.f32.mrb[86].mxu0 }
 0x3eb   : > { %v2251_v16 = vadd.f32 %v4286_v3, %v2250_v14  ;;  %v2030_v17 = vadd.f32 %v3085_v15, %v4281_v2  ;;  %v3133_v18 = vpop.f32.mrb[86].mxu1  ;;  %2362 = vxpose.xlu1.b32.cont [2/16] %v2314_v7, 128  ;;  %2338 = vxpose.xlu0.b32.cont [10/16] %v2306_v29, 128  ;;  %v2021_v19 = vpop.f32.mrb[87].mxu0 }
 0x3ec   : > { %v2262_v20 = vadd.f32 %v3133_v18, %v4286_v3  ;;  %v2022_v21 = vadd.f32 %v4281_v2, %v2021_v19  ;;  %v2253_v22 = vpop.f32.mrb[87].mxu1  ;;  %v2319_v23 = vmul.f32 %v2259_v8, %v2027_v10 }
 0x3ed   : > { %v2254_v24 = vadd.f32 %v4286_v3, %v2253_v22  ;;  %v2317_v26 = vmul.f32 %v2251_v16, %v2019_v13 }
 0x3ee   : > { %v2320_v27 = vmul.f32 %v2262_v20, %v2030_v17 }
 0x3ef   : > { %2363 = vxpose.xlu1.b32.cont [3/16] %v2315_v4, 128  ;;  %2339 = vxpose.xlu0.b32.cont [11/16] %v4311_v25, 128  ;;  %v2318_v30 = vmul.f32 %v2254_v24, %v2022_v21 }
 0x3f0   : > { %v3088_v31 = vpop.f32.mrb[88].mxu0 }
 0x3f1   : > { %v2043_v32 = vadd.f32 %v3088_v31, %v4281_v2  ;;  %v3136_v33 = vpop.f32.mrb[88].mxu1  ;;  %v2034_v29 = vpop.f32.mrb[89].mxu0 }
 0x3f2   : > { %v2275_v34 = vadd.f32 %v3136_v33, %v4286_v3  ;;  %v2035_v35 = vadd.f32 %v4281_v2, %v2034_v29  ;;  %v2266_v36 = vpop.f32.mrb[89].mxu1  ;;  %v3089_v37 = vpop.f32.mrb[90].mxu0 }
 0x3f3   : > { %2364 = vxpose.xlu1.b32.cont [4/16] %v2316_v6, 128  ;;  %2340 = vxpose.xlu0.b32.cont [12/16] %v4314_v28, 128  ;;  %v2267_v38 = vadd.f32 %v4286_v3, %v2266_v36  ;;  %v2046_v39 = vadd.f32 %v3089_v37, %v4281_v2  ;;  %v3137_v25 = vpop.f32.mrb[90].mxu1  ;;  %v2037_v40 = vpop.f32.mrb[91].mxu0 }
 0x3f4   : > { %v2278_v41 = vadd.f32 %v3137_v25, %v4286_v3  ;;  %v2038_v42 = vadd.f32 %v4281_v2, %v2037_v40  ;;  %v2269_v43 = vpop.f32.mrb[91].mxu1  ;;  %v2323_v44 = vmul.f32 %v2275_v34, %v2043_v32 }
 0x3f5   : > { %v2270_v46 = vadd.f32 %v4286_v3, %v2269_v43  ;;  %v2321_v50 = vmul.f32 %v2267_v38, %v2035_v35 }
 0x3f6   : > { %v2324_v51 = vmul.f32 %v2278_v41, %v2046_v39 }
 0x3f7   : > { %2365 = vxpose.xlu1.b32.cont [5/16] %v2317_v26, 128  ;;  %2341 = vxpose.xlu0.b32.cont [13/16] %v4326_v47, 128  ;;  %v2322_v28 = vmul.f32 %v2270_v46, %v2038_v42 }
 0x3f8   : > { %v3092_v52 = vpop.f32.mrb[92].mxu0 }
 0x3f9   : > { %v2059_v53 = vadd.f32 %v3092_v52, %v4281_v2  ;;  %v3140_v54 = vpop.f32.mrb[92].mxu1  ;;  %v2050_v55 = vpop.f32.mrb[93].mxu0 }
 0x3fa   : > { %v2291_v56 = vadd.f32 %v3140_v54, %v4286_v3  ;;  %v2051_v57 = vadd.f32 %v4281_v2, %v2050_v55  ;;  %v2282_v58 = vpop.f32.mrb[93].mxu1  ;;  %v3093_v59 = vpop.f32.mrb[94].mxu0 }
 0x3fb   : > { %2366 = vxpose.xlu1.b32.cont [6/16] %v2318_v30, 128  ;;  %2342 = vxpose.xlu0.b32.cont [14/16] %v4330_v49, 128  ;;  %v2283_v60 = vadd.f32 %v4286_v3, %v2282_v58  ;;  %v2062_v61 = vadd.f32 %v3093_v59, %v4281_v2  ;;  %v3141_v47 = vpop.f32.mrb[94].mxu1  ;;  %v2053_v62 = vpop.f32.mrb[95].mxu0 }
 0x3fc   : > { %v2294_v63 = vadd.f32 %v3141_v47, %v4286_v3  ;;  %v2054_v0 = vadd.f32 %v4281_v2, %v2053_v62  ;;  %v2285_v4 = vpop.f32.mrb[95].mxu1  ;;  %v2327_v5 = vmul.f32 %v2291_v56, %v2059_v53 }
 0x3fd   : > { %v2286_v1 = vadd.f32 %v4286_v3, %v2285_v4  ;;  %v2325_v6 = vmul.f32 %v2283_v60, %v2051_v57 }
 0x3fe   : > { %v2328_v7 = vmul.f32 %v2294_v63, %v2062_v61 }
 0x3ff   : > { %2367 = vxpose.xlu1.b32.cont [7/16] %v2319_v23, 128  ;;  %2343 = vxpose.xlu0.b32.cont [15/16] %v4323_v45, 128  ;;  %v2326_v49 = vmul.f32 %v2286_v1, %v2054_v0 }
 0x403   : > { %2368 = vxpose.xlu1.b32.cont [8/16] %v2320_v27, 128  ;;  %2344 = vxpose.xlu0.b32.end [16/16] %v4328_v48, 128 }
 0x407   : > { %2369 = vxpose.xlu1.b32.cont [9/16] %v2321_v50, 128 }
 0x40b   : > { %2370 = vxpose.xlu1.b32.cont [10/16] %v2322_v28, 128 }
 0x40f   : > { %2371 = vxpose.xlu1.b32.cont [11/16] %v2323_v44, 128 }
 0x413   : > { %2372 = vxpose.xlu1.b32.cont [12/16] %v2324_v51, 128 }
 0x417   : > { %2373 = vxpose.xlu1.b32.cont [13/16] %v2325_v6, 128 }
 0x41b   : > { %2374 = vxpose.xlu1.b32.cont [14/16] %v2326_v49, 128 }
 0x41f   : > { %2375 = vxpose.xlu1.b32.cont [15/16] %v2327_v5, 128 }
 0x423   : > { %2376 = vxpose.xlu1.b32.end [16/16] %v2328_v7, 128 }
 0x447   : > { %v2345_v2 = vpop.trf.xlu0 }
 0x44b   : > { %v2346_v9 = vpop.trf.xlu0 }
 0x44c   : > { %v2393_v45 = vadd.f32 %v2346_v9, %v2345_v2 }
 0x44f   : > { %v2347_v3 = vpop.trf.xlu0 }
 0x450   : > { %v2394_v13 = vadd.f32 %v2393_v45, %v2347_v3 }
 0x453   : > { %v2348_v10 = vpop.trf.xlu0 }
 0x454   : > { %v2395_v48 = vadd.f32 %v2394_v13, %v2348_v10  ;;  %v3635_v10 = vmov 1966171168  }
 0x457   : > { %v2349_v11 = vpop.trf.xlu0 }
 0x458   : > { %v2396_v18 = vadd.f32 %v2395_v48, %v2349_v11  ;;  %v2439_v11 = vunpack.c.l.s4 %v3635_v10 }
 0x45b   : > { %v2350_v12 = vpop.trf.xlu0 }
 0x45c   : > { %v2397_v20 = vadd.f32 %v2396_v18, %v2350_v12  ;;  %v2441_v12 = vlaneseq }
 0x45e   : > { %vm2455_vm0 = vcmp.lt.s32.totalorder %v2441_v12, 256 }
 0x45f   : > { %v2351_v8 = vpop.trf.xlu0 }
 0x460   : > { %v2398_v23 = vadd.f32 %v2397_v20, %v2351_v8 }
 0x463   : > { %v2352_v14 = vpop.trf.xlu0 }
 0x464   : > { %v2399_v27 = vadd.f32 %v2398_v23, %v2352_v14  ;;  %v2440_v14 = vunpack.c.0.s8 %v2439_v11 }
 0x467   : > { %v2377_v15 = vpop.trf.xlu1  ;;  %v2353_v16 = vpop.trf.xlu0 }
 0x468   : > { %v2400_v31 = vadd.f32 %v2399_v27, %v2353_v16 }
 0x46b   : > { %v2378_v17 = vpop.trf.xlu1  ;;  %v2354_v21 = vpop.trf.xlu0 }
 0x46c   : > { %v2401_v29 = vadd.f32 %v2400_v31, %v2354_v21  ;;  %v2414_v38 = vadd.f32 %v2378_v17, %v2377_v15  ;;  %v2442_v15 = vshrl.u32 %v2441_v12, 7 }
 0x46e   : > { %v2443_v18 = vsub.s32 %v2440_v14, %v2442_v15 }
 0x46f   : > { %v2379_v19 = vpop.trf.xlu1  ;;  %v2355_v24 = vpop.trf.xlu0 }
 0x470   : > { %v2402_v36 = vadd.f32 %v2401_v29, %v2355_v24  ;;  %v2415_v40 = vadd.f32 %v2414_v38, %v2379_v19 }
 0x473   : > { %v2380_v22 = vpop.trf.xlu1  ;;  %v2356_v32 = vpop.trf.xlu0 }
 0x474   : > { %v2403_v39 = vadd.f32 %v2402_v36, %v2356_v32  ;;  %v2416_v42 = vadd.f32 %v2415_v40, %v2380_v22 }
 0x477   : > { %v2381_v26 = vpop.trf.xlu1  ;;  %v2357_v34 = vpop.trf.xlu0 }
 0x478   : > { %v2404_v43 = vadd.f32 %v2403_v39, %v2357_v34  ;;  %v2417_v44 = vadd.f32 %v2416_v42, %v2381_v26 }
 0x47b   : > { %v2382_v30 = vpop.trf.xlu1  ;;  %v2358_v25 = vpop.trf.xlu0 }
 0x47c   : > { %v2418_v51 = vadd.f32 %v2417_v44, %v2382_v30  ;;  %v2405_v28 = vadd.f32 %v2404_v43, %v2358_v25 }
 0x47f   : > { %v2383_v33 = vpop.trf.xlu1  ;;  %v2359_v46 = vpop.trf.xlu0 }
 0x480   : > { %v2419_v52 = vadd.f32 %v2418_v51, %v2383_v33  ;;  %v2406_v54 = vadd.f32 %v2405_v28, %v2359_v46 }
 0x483   : > { %v2384_v35 = vpop.trf.xlu1  ;;  %v2360_v56 = vpop.trf.xlu0 }
 0x484   : > { %v2420_v55 = vadd.f32 %v2419_v52, %v2384_v35  ;;  %v2407_v59 = vadd.f32 %v2406_v54, %v2360_v56 }
 0x486   : > { %v2408_v62 = vrot.slane %v2407_v59, 4 }
 0x487   : > { %v2385_v37 = vpop.trf.xlu1 }
 0x488   : > { %v2421_v57 = vadd.f32 %v2420_v55, %v2385_v37  ;;  %v2409_v5 = vadd.f32 %v2408_v62, %v2407_v59 }
 0x48a   : > { %v2410_v49 = vrot.slane %v2409_v5, 2 }
 0x48b   : > { %v2386_v41 = vpop.trf.xlu1 }
 0x48c   : > { %v2422_v60 = vadd.f32 %v2421_v57, %v2386_v41  ;;  %v2411_v3 = vadd.f32 %v2410_v49, %v2409_v5 }
 0x48e   : > { %v2412_v13 = vrot.slane %v2411_v3, 1 }
 0x48f   : > { %v2387_v50 = vpop.trf.xlu1 }
 0x490   : > { %v2423_v61 = vadd.f32 %v2422_v60, %v2387_v50  ;;  %v2413_v17 = vadd.f32 %v2412_v13, %v2411_v3 }
 0x493   : > { %v2388_v53 = vpop.trf.xlu1 }
 0x494   : > { %v2424_v63 = vadd.f32 %v2423_v61, %v2388_v53 }
 0x497   : > { %v2389_v58 = vpop.trf.xlu1 }
 0x498   : > { %v2425_v0 = vadd.f32 %v2424_v63, %v2389_v58 }
 0x49b   : > { %v2390_v47 = vpop.trf.xlu1 }
 0x49c   : > { %v2426_v1 = vadd.f32 %v2425_v0, %v2390_v47 }
 0x49f   : > { %v2391_v4 = vpop.trf.xlu1 }
 0x4a0   : > { %v2427_v6 = vadd.f32 %v2426_v1, %v2391_v4 }
 0x4a3   : > { %v2392_v7 = vpop.trf.xlu1 }
 0x4a4   : > { %v2428_v2 = vadd.f32 %v2427_v6, %v2392_v7 }
 0x4a6   : > { %v2429_v9 = vrot.slane %v2428_v2, 4 }
 0x4a8   : > { %v2430_v8 = vadd.f32 %v2429_v9, %v2428_v2 }
 0x4aa   : > { %v2431_v45 = vrot.slane %v2430_v8, 2 }
 0x4ac   : > { %v2432_v48 = vadd.f32 %v2431_v45, %v2430_v8 }
 0x4ae   : > { %v2433_v16 = vrot.slane %v2432_v48, 1 }
 0x4b0   : > { %v2434_v19 = vadd.f32 %v2433_v16, %v2432_v48 }
 0x4b2   : > { %v2437_v20 = vcombine.low %v2413_v17, %v2434_v19 }
 0x4b4   : > { %v2444_v21 = vrot.slane %v2437_v20, %v2443_v18 }
 0x4b6   : > { %v2451_v22 = vrot.slane %v2444_v21, %v2443_v18 }
 0x4b8   : > { %2457 = vst.msk [vmem:[%s612_s2] sm:$0x3] %vm2455_vm0, %v2451_v22 }
 0x4b9   : > { %3548 = shalt.err (!%p3545_p3)
}
 0x4ba   : > { %s3549_s8 = scalar_lea.hbm %s4375_s4, 32  ;;  %s3553_s0 = scalar_lea.hbm %s4479_s13, 64 }
 0x4bb   : > { %p3550_p12 = scmp.ne.s32.totalorder %s4375_s4, %s3549_s8  ;;  %p3554_p0 = scmp.lt.u32.totalorder %s4375_s4, %s4479_s13 }
 0x4bc   : > { %p3555_p6 = scmp.lt.u32.totalorder %s3553_s0, %s3549_s8  ;;  %p3557_p4 = scmp.lt.u32.totalorder %s3549_s8, %s4375_s4 }
 0x4bd   : > { %p3551_p1 = pnand %p3550_p12, %p4480_p10 }
 0x4be   : > { %p3556_p2 = por %p3555_p6, %p3554_p0 }
 0x4bf   : > { %p3552_p13 = pneg %p3551_p1 }
 0x4c0   : > { %p3558_p5 = por %p3557_p4, %p3556_p2 }
 0x4c2   : > { %p3559_p7 = pnand %p3558_p5, %p3552_p13 }
 0x4c4   : > { %3562 = shalt.err (!%p3559_p7)
}
 0x4c5   : > { %3170 = dma.vmem_to_hbm [thread:$0]  (%p4480_p10), %s4377_s11, 32, %s4375_s4, %s2459_s17  }
 0x4c6 PF: > { %s2485_s26 = sand.u32 1, %s3609_s29   ;;  %p4481_p9 = scmp.ne.s32.totalorder %s4461_s28, 0 }
 0x4c7   : > { %p4482_p8 = scmp.ge.s32.totalorder %s3621_s16, 2  ;;  %s2486_s23 = scalar_lea.sflag [#allocation4], %s2485_s26 }
 0x4c9   : > { %p3199_p11 = pnand %p4482_p8, %p4481_p9 }
 0x4cb   : > { %3604 = dma.done.wait (!%p3199_p11), %s2486_s23, 32  }
 0x4cc   : > { %3606 = vsyncadd (!%p3199_p11), %s2486_s23, 4294967264  ;;  %p33_p3 = scmp.ge.s32.totalorder %s3906_s21, 4   ;;  %s4483_s29 = smov %s3613_s30 }
 0x4cd   : > { %s4484_s30 = smov %s3617_s15  ;;  %s4485_s15 = smov %s3917_s7 }
 0x4ce   : > { %s4486_s16 = smov %s3906_s21  ;;  %35 = sbr.rel (!%p33_p3) target bundleno = 22 (0x16), region = 158 }
 0x4d5   :  { %2491 = vsyncpa [#allocation3], 1 }
 0x4d6   :  { %2493 = vsyncpa [#allocation3 + $0x1], 1 }
 0x4d7   :  { %2494 = vsyncpa [#allocation6], 1 }
 0x4d8   :  { %2496 = vsyncpa [#allocation6 + $0x1], 1 }
 0x4d9   :  { %2497 = vsyncpa [#allocation9], 1 }
 0x4da   :  { %2498 = vsyncpa [#allocation12], 1 }
 0x4db   :  { %2499 = vsyncpa [#allocation15], 1 }
 0x4dc   :  { %2500 = vsyncpa [#allocation4], 1 }
 0x4dd   :  { %2502 = vsyncpa [#allocation4 + $0x1], 1 }

</bundles_post_ra>
